<compile_context>
chip_gen: v5e
topology: v5e:2x2
jax: 0.10.0
libtpu: 0.0.40
codegen_flags: <defaults>
</compile_context>

<pallas_src>
import math

import jax
import jax.numpy as jnp
import numpy as np
from jax.experimental import pallas as pl
from jax.experimental.pallas import tpu as pltpu


def _round_up(x, m):
    return ((x + m - 1) // m) * m


# ----------------------------------------------------------------------------
# Pallas kernel
# ----------------------------------------------------------------------------
def agent_state_encoder_kernel(
    fc_ref,      # (T, Bb)        forecast values, time-major, f32
    sc_ref,      # (Bb, Ds)       scalar variables, f32
    gvec_ref,    # (8, H)         rows: w_ir, w_iz, w_in, b_r, b_z, b_in, b_hn, 0
    wcat_ref,    # (H, 3*GP)      hidden weights, gate g at lanes [g*GP, g*GP+H), bf16
    w1f_ref,     # (H, hidP)      MLP layer-1 weight (forecast part), bf16, lane-padded
    w1s_ref,     # (Ds, hidP)     MLP layer-1 weight (scalar part),  bf16, lane-padded
    w2_ref,      # (hidP, EP)     MLP layer-2 weight, bf16, lane-padded
    bvec_ref,    # (2, P)         row 0 = b1 (padded), row 1 = b2 (padded), f32
    out_ref,     # (Bb, EP)       lane-dense output
    gx_r_ref, gx_z_ref, gx_n_ref,  # scratch: (T, Bb, H) f32 each
):
    T, Bb = fc_ref.shape
    H = gvec_ref.shape[1]
    GP = wcat_ref.shape[1] // 3
    hidP = w1f_ref.shape[1]
    EP = w2_ref.shape[1]

    # ---- hoisted input-gate precompute (once, off the serial chain) ----
    fc = fc_ref[...].reshape(T, Bb, 1)                     # (T, Bb, 1)
    gv = gvec_ref[...]                                     # (8, H)

    def row(i):                                            # (1, 1, H) view of row i
        return gv[i:i + 1, :].reshape(1, 1, H)

    gx_r_ref[...] = fc * row(0) + row(3)                   # W_ir*x + (b_ir + b_hr)
    gx_z_ref[...] = fc * row(1) + row(4)                   # W_iz*x + (b_iz + b_hz)
    gx_n_ref[...] = fc * row(2) + row(5)                   # W_in*x + b_in

    # n-gate hidden bias, broadcast hoisted out of the loop (no per-iter bcast).
    b_hn = jnp.broadcast_to(gv[6:7, :], (Bb, H))

    # ---- GRU recurrence (PyTorch semantics, gate order [r, z, n]) ----
    # One fused bf16 MXU dot per step; RHS streamed from VMEM (low vreg pressure).
    # TODO(synk): for larger H, pin the RHS on the MXU across steps via
    # pltpu.matmul_push_rhs / matmul_acc_lhs / matmul_pop.
    def step(t, h):
        gh = jnp.dot(h.astype(jnp.bfloat16), wcat_ref[...],
                     preferred_element_type=jnp.float32)   # (Bb, 3*GP)
        r = jax.nn.sigmoid(gx_r_ref[t] + gh[:, 0:H])
        z = jax.nn.sigmoid(gx_z_ref[t] + gh[:, GP:GP + H])
        n = jnp.tanh(gx_n_ref[t] + r * (gh[:, 2 * GP:2 * GP + H] + b_hn))
        return (1.0 - z) * n + z * h

    unroll = True if T <= 16 else 4
    h = jax.lax.fori_loop(0, T, step, jnp.zeros((Bb, H), jnp.float32),
                          unroll=unroll)

    # ---- MLP on concat([h, scalars]); concat folded into a split matmul ----
    hid = jnp.dot(h.astype(jnp.bfloat16), w1f_ref[...],
                  preferred_element_type=jnp.float32)
    hid = hid + jnp.dot(sc_ref[...].astype(jnp.bfloat16), w1s_ref[...],
                        preferred_element_type=jnp.float32)
    hid = jnp.maximum(hid + bvec_ref[0:1, :hidP], 0.0)     # ReLU, (Bb, hidP)

    out = jnp.dot(hid.astype(jnp.bfloat16), w2_ref[...],
                  preferred_element_type=jnp.float32)
    out = jnp.maximum(out + bvec_ref[1:2, :EP], 0.0)       # ReLU, lane-dense (Bb, EP)
    out_ref[...] = out.astype(out_ref.dtype)


# ----------------------------------------------------------------------------
# Parameter packing (once, outside the hot path)
# ----------------------------------------------------------------------------
def prepare_params(params):
    """Pack / pad / cast raw PyTorch-layout params into kernel-ready form."""
    H = params["w_hh"].shape[1]
    in1, hid = params["w1"].shape
    Ds = in1 - H
    E = params["w2"].shape[1]

    GP = max(128, _round_up(H, 128))          # lane group per gate
    hidP = max(128, _round_up(hid, 128))
    EP = max(128, _round_up(E, 128))
    P = max(hidP, EP)

    def gate(x, g):
        return x[g * H:(g + 1) * H]

    w_ih, w_hh = params["w_ih"], params["w_hh"]
    b_ih, b_hh = params["b_ih"], params["b_hh"]

    # Six tiny GRU vectors packed into one (8, H) array.
    gvec = jnp.stack([
        gate(w_ih, 0)[:, 0], gate(w_ih, 1)[:, 0], gate(w_ih, 2)[:, 0],
        gate(b_ih, 0) + gate(b_hh, 0),
        gate(b_ih, 1) + gate(b_hh, 1),
        gate(b_ih, 2), gate(b_hh, 2),
        jnp.zeros((H,), jnp.float32),
    ], axis=0).astype(jnp.float32)

    # Hidden weights fused into one (H, 3*GP) RHS, one 128-lane group per gate.
    w_cat = jnp.zeros((H, 3 * GP), jnp.float32)
    w_cat = w_cat.at[:, 0:H].set(gate(w_hh, 0).T)
    w_cat = w_cat.at[:, GP:GP + H].set(gate(w_hh, 1).T)
    w_cat = w_cat.at[:, 2 * GP:2 * GP + H].set(gate(w_hh, 2).T)
    w_cat = w_cat.astype(jnp.bfloat16)

    def pad2(x, r, c):
        return jnp.zeros((r, c), jnp.float32).at[:x.shape[0], :x.shape[1]].set(x)

    w1_f = pad2(params["w1"][:H], H, hidP).astype(jnp.bfloat16)
    w1_s = pad2(params["w1"][H:], Ds, hidP).astype(jnp.bfloat16)
    w2 = pad2(params["w2"], hidP, EP).astype(jnp.bfloat16)

    bvec = jnp.zeros((2, P), jnp.float32)
    bvec = bvec.at[0, :hid].set(params["b1"])
    bvec = bvec.at[1, :E].set(params["b2"])

    return dict(gvec=gvec, w_cat=w_cat, w1_f=w1_f, w1_s=w1_s, w2=w2, bvec=bvec,
                H=H, Ds=Ds, hidP=hidP, EP=EP, E=E)


def _detect_tensorcores():
    # Best-effort: v7x exposes 2 TensorCores per chip; fall back to 1.
    try:
        n = getattr(jax.devices()[0], "num_cores", None)
        return int(n) if n else 1
    except Exception:
        return 1


# ----------------------------------------------------------------------------
# Wrapper
# ----------------------------------------------------------------------------
def agent_state_encoder(scalar_vars, forecast, kp, *, block_b=None,
                        num_tensorcores=None):
    """scalar_vars: (B, Ds) f32, forecast: (B, T, 1) f32 -> (B, E) f32."""
    B, Ds = scalar_vars.shape
    T = forecast.shape[1]
    H, hidP, EP, E = kp["H"], kp["hidP"], kp["EP"], kp["E"]
    GP3 = kp["w_cat"].shape[1]
    P = kp["bvec"].shape[1]

    fc_tb = jnp.transpose(forecast[..., 0], (1, 0))        # (T, B) time-major

    if num_tensorcores is None:
        num_tensorcores = _detect_tensorcores()
    if block_b is None:
        if num_tensorcores > 1 and B > 128:
            # v7x: grid >= 2 so the "parallel" axis shards across both TCs;
            # 128-multiple keeps every lane-dim block aligned.
            block_b = _round_up(pl.cdiv(B, num_tensorcores), 128)
        else:
            # single TC: biggest block (amortize serial GRU chain + grid overhead)
            block_b = min(B, 1024)
    block_b = min(block_b, B)
    grid = (pl.cdiv(B, block_b),)

    def resident(shape):   # weights: same block every grid step (stay in VMEM)
        return pl.BlockSpec(shape, lambda i: (0,) * len(shape))

    in_specs = [
        pl.BlockSpec((T, block_b), lambda i: (0, i)),      # forecast (T, B)
        pl.BlockSpec((block_b, Ds), lambda i: (i, 0)),     # scalar_vars
        resident((8, H)),                                  # packed GRU vectors
        resident((H, GP3)),                                # fused hidden RHS
        resident((H, hidP)), resident((Ds, hidP)),         # MLP layer 1
        resident((hidP, EP)),                              # MLP layer 2
        resident((2, P)),                                  # packed biases
    ]
    out_spec = pl.BlockSpec((block_b, EP), lambda i: (i, 0))

    # Rough VMEM budget: gx scratch slabs + pipelined I/O tiles + resident weights.
    lane = 128
    gx_bytes = 3 * T * block_b * max(H, lane) * 4
    io_bytes = 2 * (T * _round_up(block_b, lane) * 4
                    + _round_up(block_b, 8) * lane * 4
                    + _round_up(block_b, 8) * EP * 4)
    w_bytes = 2 * (8 * lane * 4 + H * GP3 * 2 + H * hidP * 2
                   + Ds * hidP * 2 + hidP * EP * 2 + 2 * P * 4)
    vmem_limit = int(min(max(2 * (gx_bytes + io_bytes + w_bytes),
                             32 * 1024 * 1024), 64 * 1024 * 1024))
    # TODO(synk): if T/H grow in production (v7x has only 64 MiB VMEM), tile T
    # or recompute gx inside the loop instead of keeping 3 (T, Bb, H) slabs.

    out = pl.pallas_call(
        agent_state_encoder_kernel,
        out_shape=jax.ShapeDtypeStruct((B, EP), jnp.float32),
        grid_spec=pltpu.PrefetchScalarGridSpec(
            num_scalar_prefetch=0,
            grid=grid,
            in_specs=in_specs,
            out_specs=out_spec,
            scratch_shapes=[
                pltpu.VMEM((T, block_b, H), jnp.float32),
                pltpu.VMEM((T, block_b, H), jnp.float32),
                pltpu.VMEM((T, block_b, H), jnp.float32),
            ],
        ),
        compiler_params=pltpu.CompilerParams(
            dimension_semantics=("parallel",),
            vmem_limit_bytes=vmem_limit),
    )(fc_tb, scalar_vars, kp["gvec"], kp["w_cat"], kp["w1_f"], kp["w1_s"],
      kp["w2"], kp["bvec"])

    return out[:, :E]                                      # drop lane padding


# ----------------------------------------------------------------------------
# Deterministic parameter init (PyTorch-style uniform(-1/sqrt(fan), 1/sqrt(fan)))
# ----------------------------------------------------------------------------
def init_params(key, *, scalar_dim, forecast_hidden, mlp_hidden, enc_dim):
    H = forecast_hidden
    ks = jax.random.split(key, 8)

    def u(k, shape, fan):
        bound = 1.0 / math.sqrt(fan)
        return jax.random.uniform(k, shape, jnp.float32, -bound, bound)

    # nn.GRU(input_size=1, hidden_size=H): gate order [r, z, n].
    w_ih = u(ks[0], (3 * H, 1), H)
    w_hh = u(ks[1], (3 * H, H), H)
    b_ih = u(ks[2], (3 * H,), H)
    b_hh = u(ks[3], (3 * H,), H)

    # Linear(H + Ds -> mlp_hidden) stored input-major (in, out); Linear(mlp_hidden -> E).
    fan1 = H + scalar_dim
    w1 = u(ks[4], (H + scalar_dim, mlp_hidden), fan1)
    b1 = u(ks[5], (mlp_hidden,), fan1)
    w2 = u(ks[6], (mlp_hidden, enc_dim), mlp_hidden)
    b2 = u(ks[7], (enc_dim,), mlp_hidden)

    return dict(w_ih=w_ih, w_hh=w_hh, b_ih=b_ih, b_hh=b_hh,
                w1=w1, b1=b1, w2=w2, b2=b2)


# ----------------------------------------------------------------------------
# Pure-JAX f32 reference (standard PyTorch GRU formulas, unfolded biases)
# ----------------------------------------------------------------------------
def reference(scalar_vars, forecast, params):
    fc = forecast[..., 0]                       # (B, T)
    B, T = fc.shape
    H = params["w_hh"].shape[1]
    w_ih_t = params["w_ih"].T                   # (1, 3H)
    w_hh_t = params["w_hh"].T                   # (H, 3H)
    b_ih = params["b_ih"][None, :]
    b_hh = params["b_hh"][None, :]
    h = jnp.zeros((B, H), jnp.float32)
    for t in range(T):
        x_t = fc[:, t:t + 1]
        gx = x_t * w_ih_t + b_ih
        gh = h @ w_hh_t + b_hh
        r = jax.nn.sigmoid(gx[:, :H] + gh[:, :H])
        z = jax.nn.sigmoid(gx[:, H:2 * H] + gh[:, H:2 * H])
        n = jnp.tanh(gx[:, 2 * H:] + r * gh[:, 2 * H:])
        h = (1.0 - z) * n + z * h
    combined = jnp.concatenate([h, scalar_vars], axis=-1)
    hid = jnp.maximum(combined @ params["w1"] + params["b1"], 0.0)
    return jnp.maximum(hid @ params["w2"] + params["b2"], 0.0)


if __name__ == "__main__":
    # Small shapes consistent with the module's forward.
    B, T = 8, 8                 # batch, forecast seq_len
    scalar_dim = 4              # agent_scalar_dim
    forecast_hidden = 32        # world_model_config["forecast_hidden_size"]
    mlp_hidden = 32             # world_model_config["agent_hidden_size"]
    enc_dim = 16                # world_model_config["agent_enc_dim"]

    root = jax.random.PRNGKey(0)
    k_par, k_sc, k_fc = jax.random.split(root, 3)

    params = init_params(k_par, scalar_dim=scalar_dim,
                         forecast_hidden=forecast_hidden,
                         mlp_hidden=mlp_hidden, enc_dim=enc_dim)
    kernel_params = prepare_params(params)

    scalar_vars = jax.random.normal(k_sc, (B, scalar_dim), jnp.float32)
    forecast = jax.random.normal(k_fc, (B, T, 1), jnp.float32)

    out = agent_state_encoder(scalar_vars, forecast, kernel_params)
    out = jax.block_until_ready(out)

    ref = reference(scalar_vars, forecast, params)
    # bf16 MXU inputs (f32 accumulation) -> loosened tolerance vs f32 reference.
    np.testing.assert_allclose(np.asarray(out), np.asarray(ref),
                               rtol=3e-2, atol=3e-2)
    assert out.shape == (B, enc_dim) and out.dtype == jnp.float32

    print("KERNEL_OK")
</pallas_src>

<mosaic_0001>
module attributes {stable_mosaic.version = 11 : i64} {
  func.func @agent_state_encoder_kernel(%arg0: i32, %arg1: memref<8x8xf32, #tpu.memory_space<vmem>>, %arg2: memref<8x4xf32, #tpu.memory_space<vmem>>, %arg3: memref<8x32xf32, #tpu.memory_space<vmem>>, %arg4: memref<32x384xbf16, #tpu.memory_space<vmem>>, %arg5: memref<32x128xbf16, #tpu.memory_space<vmem>>, %arg6: memref<4x128xbf16, #tpu.memory_space<vmem>>, %arg7: memref<128x128xbf16, #tpu.memory_space<vmem>>, %arg8: memref<2x128xf32, #tpu.memory_space<vmem>>, %arg9: memref<8x128xf32, #tpu.memory_space<vmem>>, %arg10: memref<8x8x32xf32, #tpu.memory_space<vmem>>, %arg11: memref<8x8x32xf32, #tpu.memory_space<vmem>>, %arg12: memref<8x8x32xf32, #tpu.memory_space<vmem>>) attributes {dimension_semantics = [#tpu.dimension_semantics<parallel>], iteration_bounds = array<i64: 1>, scalar_prefetch = 0 : i64, scratch_operands = 3 : i64, tpu.core_type = #tpu.core_type<tc>, window_params = [{transform_indices = @transform_0, window_bounds = array<i64: 8, 8>}, {transform_indices = @transform_1, window_bounds = array<i64: 8, 4>}, {pipeline_mode = #tpu.pipeline_mode<synchronous>, transform_indices = @transform_2, window_bounds = array<i64: 8, 32>}, {pipeline_mode = #tpu.pipeline_mode<synchronous>, transform_indices = @transform_3, window_bounds = array<i64: 32, 384>}, {pipeline_mode = #tpu.pipeline_mode<synchronous>, transform_indices = @transform_4, window_bounds = array<i64: 32, 128>}, {pipeline_mode = #tpu.pipeline_mode<synchronous>, transform_indices = @transform_5, window_bounds = array<i64: 4, 128>}, {pipeline_mode = #tpu.pipeline_mode<synchronous>, transform_indices = @transform_6, window_bounds = array<i64: 128, 128>}, {pipeline_mode = #tpu.pipeline_mode<synchronous>, transform_indices = @transform_7, window_bounds = array<i64: 2, 128>}, {transform_indices = @transform_8, window_bounds = array<i64: 8, 128>}]} {
    %c0 = arith.constant 0 : index
    %c0_0 = arith.constant 0 : index
    %0 = vector.load %arg1[%c0, %c0_0] : memref<8x8xf32, #tpu.memory_space<vmem>>, vector<8x8xf32>
    %1 = vector.shape_cast %0 : vector<8x8xf32> to vector<8x8x1xf32>
    %c0_1 = arith.constant 0 : index
    %c0_2 = arith.constant 0 : index
    %2 = vector.load %arg3[%c0_1, %c0_2] : memref<8x32xf32, #tpu.memory_space<vmem>>, vector<8x32xf32>
    %3 = vector.extract_strided_slice %2 {offsets = [0, 0], sizes = [1, 32], strides = [1, 1]} : vector<8x32xf32> to vector<1x32xf32>
    %4 = vector.shape_cast %3 : vector<1x32xf32> to vector<1x1x32xf32>
    %5 = vector.broadcast %1 : vector<8x8x1xf32> to vector<8x8x32xf32>
    %6 = vector.broadcast %4 : vector<1x1x32xf32> to vector<8x8x32xf32>
    %7 = arith.mulf %5, %6 : vector<8x8x32xf32>
    %8 = vector.extract_strided_slice %2 {offsets = [3, 0], sizes = [1, 32], strides = [1, 1]} : vector<8x32xf32> to vector<1x32xf32>
    %9 = vector.shape_cast %8 : vector<1x32xf32> to vector<1x1x32xf32>
    %10 = vector.broadcast %9 : vector<1x1x32xf32> to vector<8x8x32xf32>
    %11 = arith.addf %7, %10 : vector<8x8x32xf32>
    %c0_3 = arith.constant 0 : index
    %c0_4 = arith.constant 0 : index
    %c0_5 = arith.constant 0 : index
    %12 = vector.load %arg10[%c0_3, %c0_4, %c0_5] : memref<8x8x32xf32, #tpu.memory_space<vmem>>, vector<8x8x32xf32>
    tpu.vector_store %arg10[%c0_3, %c0_4, %c0_5], %11 {strides = array<i32>} : memref<8x8x32xf32, #tpu.memory_space<vmem>>, vector<8x8x32xf32>,
    %13 = vector.extract_strided_slice %2 {offsets = [1, 0], sizes = [1, 32], strides = [1, 1]} : vector<8x32xf32> to vector<1x32xf32>
    %14 = vector.shape_cast %13 : vector<1x32xf32> to vector<1x1x32xf32>
    %15 = vector.broadcast %1 : vector<8x8x1xf32> to vector<8x8x32xf32>
    %16 = vector.broadcast %14 : vector<1x1x32xf32> to vector<8x8x32xf32>
    %17 = arith.mulf %15, %16 : vector<8x8x32xf32>
    %18 = vector.extract_strided_slice %2 {offsets = [4, 0], sizes = [1, 32], strides = [1, 1]} : vector<8x32xf32> to vector<1x32xf32>
    %19 = vector.shape_cast %18 : vector<1x32xf32> to vector<1x1x32xf32>
    %20 = vector.broadcast %19 : vector<1x1x32xf32> to vector<8x8x32xf32>
    %21 = arith.addf %17, %20 : vector<8x8x32xf32>
    %c0_6 = arith.constant 0 : index
    %c0_7 = arith.constant 0 : index
    %c0_8 = arith.constant 0 : index
    %22 = vector.load %arg11[%c0_6, %c0_7, %c0_8] : memref<8x8x32xf32, #tpu.memory_space<vmem>>, vector<8x8x32xf32>
    tpu.vector_store %arg11[%c0_6, %c0_7, %c0_8], %21 {strides = array<i32>} : memref<8x8x32xf32, #tpu.memory_space<vmem>>, vector<8x8x32xf32>,
    %23 = vector.extract_strided_slice %2 {offsets = [2, 0], sizes = [1, 32], strides = [1, 1]} : vector<8x32xf32> to vector<1x32xf32>
    %24 = vector.shape_cast %23 : vector<1x32xf32> to vector<1x1x32xf32>
    %25 = vector.broadcast %1 : vector<8x8x1xf32> to vector<8x8x32xf32>
    %26 = vector.broadcast %24 : vector<1x1x32xf32> to vector<8x8x32xf32>
    %27 = arith.mulf %25, %26 : vector<8x8x32xf32>
    %28 = vector.extract_strided_slice %2 {offsets = [5, 0], sizes = [1, 32], strides = [1, 1]} : vector<8x32xf32> to vector<1x32xf32>
    %29 = vector.shape_cast %28 : vector<1x32xf32> to vector<1x1x32xf32>
    %30 = vector.broadcast %29 : vector<1x1x32xf32> to vector<8x8x32xf32>
    %31 = arith.addf %27, %30 : vector<8x8x32xf32>
    %c0_9 = arith.constant 0 : index
    %c0_10 = arith.constant 0 : index
    %c0_11 = arith.constant 0 : index
    %32 = vector.load %arg12[%c0_9, %c0_10, %c0_11] : memref<8x8x32xf32, #tpu.memory_space<vmem>>, vector<8x8x32xf32>
    tpu.vector_store %arg12[%c0_9, %c0_10, %c0_11], %31 {strides = array<i32>} : memref<8x8x32xf32, #tpu.memory_space<vmem>>, vector<8x8x32xf32>,
    %33 = vector.extract_strided_slice %2 {offsets = [6, 0], sizes = [1, 32], strides = [1, 1]} : vector<8x32xf32> to vector<1x32xf32>
    %34 = vector.shape_cast %33 : vector<1x32xf32> to vector<1x32xf32>
    %35 = vector.broadcast %34 : vector<1x32xf32> to vector<8x32xf32>
    %cst = arith.constant 0.000000e+00 : f32
    %36 = vector.broadcast %cst : f32 to vector<8x32xf32>
    %c0_i32 = arith.constant 0 : i32
    %37 = arith.truncf %36 : vector<8x32xf32> to vector<8x32xbf16>
    %c0_12 = arith.constant 0 : index
    %c0_13 = arith.constant 0 : index
    %38 = vector.load %arg4[%c0_12, %c0_13] : memref<32x384xbf16, #tpu.memory_space<vmem>>, vector<32x384xbf16>
    %cst_14 = arith.constant dense<0.000000e+00> : vector<8x384xf32>
    %39 = tpu.matmul %37, %38, %cst_14 {dimension_numbers = #tpu.dot_dimension_numbers<[1], [0], [0], [1], [0, 0, 1, 1], [], []>} : vector<8x32xbf16>, vector<32x384xbf16>, vector<8x384xf32> -> vector<8x384xf32>
    %40 = arith.index_cast %c0_i32 : i32 to index
    %c0_15 = arith.constant 0 : index
    %c0_16 = arith.constant 0 : index
    %41 = vector.load %arg10[%40, %c0_15, %c0_16] : memref<8x8x32xf32, #tpu.memory_space<vmem>>, vector<1x8x32xf32>
    %42 = vector.shape_cast %41 : vector<1x8x32xf32> to vector<8x32xf32>
    %43 = vector.extract_strided_slice %39 {offsets = [0, 0], sizes = [8, 32], strides = [1, 1]} : vector<8x384xf32> to vector<8x32xf32>
    %44 = arith.addf %42, %43 : vector<8x32xf32>
    %45 = arith.negf %44 : vector<8x32xf32>
    %46 = math.exp %45 : vector<8x32xf32>
    %cst_17 = arith.constant 1.000000e+00 : f32
    %47 = vector.broadcast %cst_17 : f32 to vector<8x32xf32>
    %48 = arith.addf %47, %46 : vector<8x32xf32>
    %49 = arith.divf %47, %48 : vector<8x32xf32>
    %50 = arith.index_cast %c0_i32 : i32 to index
    %c0_18 = arith.constant 0 : index
    %c0_19 = arith.constant 0 : index
    %51 = vector.load %arg11[%50, %c0_18, %c0_19] : memref<8x8x32xf32, #tpu.memory_space<vmem>>, vector<1x8x32xf32>
    %52 = vector.shape_cast %51 : vector<1x8x32xf32> to vector<8x32xf32>
    %53 = vector.extract_strided_slice %39 {offsets = [0, 128], sizes = [8, 32], strides = [1, 1]} : vector<8x384xf32> to vector<8x32xf32>
    %54 = arith.addf %52, %53 : vector<8x32xf32>
    %55 = arith.negf %54 : vector<8x32xf32>
    %56 = math.exp %55 : vector<8x32xf32>
    %cst_20 = arith.constant 1.000000e+00 : f32
    %57 = vector.broadcast %cst_20 : f32 to vector<8x32xf32>
    %58 = arith.addf %57, %56 : vector<8x32xf32>
    %59 = arith.divf %57, %58 : vector<8x32xf32>
    %60 = arith.index_cast %c0_i32 : i32 to index
    %c0_21 = arith.constant 0 : index
    %c0_22 = arith.constant 0 : index
    %61 = vector.load %arg12[%60, %c0_21, %c0_22] : memref<8x8x32xf32, #tpu.memory_space<vmem>>, vector<1x8x32xf32>
    %62 = vector.shape_cast %61 : vector<1x8x32xf32> to vector<8x32xf32>
    %63 = vector.extract_strided_slice %39 {offsets = [0, 256], sizes = [8, 32], strides = [1, 1]} : vector<8x384xf32> to vector<8x32xf32>
    %64 = arith.addf %63, %35 : vector<8x32xf32>
    %65 = arith.mulf %49, %64 : vector<8x32xf32>
    %66 = arith.addf %62, %65 : vector<8x32xf32>
    %67 = math.tanh %66 : vector<8x32xf32>
    %cst_23 = arith.constant 1.000000e+00 : f32
    %68 = vector.broadcast %cst_23 : f32 to vector<8x32xf32>
    %69 = arith.subf %68, %59 : vector<8x32xf32>
    %70 = arith.mulf %69, %67 : vector<8x32xf32>
    %71 = arith.mulf %59, %36 : vector<8x32xf32>
    %72 = arith.addf %70, %71 : vector<8x32xf32>
    %c1_i32 = arith.constant 1 : i32
    %73 = arith.truncf %72 : vector<8x32xf32> to vector<8x32xbf16>
    %c0_24 = arith.constant 0 : index
    %c0_25 = arith.constant 0 : index
    %74 = vector.load %arg4[%c0_24, %c0_25] : memref<32x384xbf16, #tpu.memory_space<vmem>>, vector<32x384xbf16>
    %cst_26 = arith.constant dense<0.000000e+00> : vector<8x384xf32>
    %75 = tpu.matmul %73, %74, %cst_26 {dimension_numbers = #tpu.dot_dimension_numbers<[1], [0], [0], [1], [0, 0, 1, 1], [], []>} : vector<8x32xbf16>, vector<32x384xbf16>, vector<8x384xf32> -> vector<8x384xf32>
    %76 = arith.index_cast %c1_i32 : i32 to index
    %c0_27 = arith.constant 0 : index
    %c0_28 = arith.constant 0 : index
    %77 = vector.load %arg10[%76, %c0_27, %c0_28] : memref<8x8x32xf32, #tpu.memory_space<vmem>>, vector<1x8x32xf32>
    %78 = vector.shape_cast %77 : vector<1x8x32xf32> to vector<8x32xf32>
    %79 = vector.extract_strided_slice %75 {offsets = [0, 0], sizes = [8, 32], strides = [1, 1]} : vector<8x384xf32> to vector<8x32xf32>
    %80 = arith.addf %78, %79 : vector<8x32xf32>
    %81 = arith.negf %80 : vector<8x32xf32>
    %82 = math.exp %81 : vector<8x32xf32>
    %cst_29 = arith.constant 1.000000e+00 : f32
    %83 = vector.broadcast %cst_29 : f32 to vector<8x32xf32>
    %84 = arith.addf %83, %82 : vector<8x32xf32>
    %85 = arith.divf %83, %84 : vector<8x32xf32>
    %86 = arith.index_cast %c1_i32 : i32 to index
    %c0_30 = arith.constant 0 : index
    %c0_31 = arith.constant 0 : index
    %87 = vector.load %arg11[%86, %c0_30, %c0_31] : memref<8x8x32xf32, #tpu.memory_space<vmem>>, vector<1x8x32xf32>
    %88 = vector.shape_cast %87 : vector<1x8x32xf32> to vector<8x32xf32>
    %89 = vector.extract_strided_slice %75 {offsets = [0, 128], sizes = [8, 32], strides = [1, 1]} : vector<8x384xf32> to vector<8x32xf32>
    %90 = arith.addf %88, %89 : vector<8x32xf32>
    %91 = arith.negf %90 : vector<8x32xf32>
    %92 = math.exp %91 : vector<8x32xf32>
    %cst_32 = arith.constant 1.000000e+00 : f32
    %93 = vector.broadcast %cst_32 : f32 to vector<8x32xf32>
    %94 = arith.addf %93, %92 : vector<8x32xf32>
    %95 = arith.divf %93, %94 : vector<8x32xf32>
    %96 = arith.index_cast %c1_i32 : i32 to index
    %c0_33 = arith.constant 0 : index
    %c0_34 = arith.constant 0 : index
    %97 = vector.load %arg12[%96, %c0_33, %c0_34] : memref<8x8x32xf32, #tpu.memory_space<vmem>>, vector<1x8x32xf32>
    %98 = vector.shape_cast %97 : vector<1x8x32xf32> to vector<8x32xf32>
    %99 = vector.extract_strided_slice %75 {offsets = [0, 256], sizes = [8, 32], strides = [1, 1]} : vector<8x384xf32> to vector<8x32xf32>
    %100 = arith.addf %99, %35 : vector<8x32xf32>
    %101 = arith.mulf %85, %100 : vector<8x32xf32>
    %102 = arith.addf %98, %101 : vector<8x32xf32>
    %103 = math.tanh %102 : vector<8x32xf32>
    %cst_35 = arith.constant 1.000000e+00 : f32
    %104 = vector.broadcast %cst_35 : f32 to vector<8x32xf32>
    %105 = arith.subf %104, %95 : vector<8x32xf32>
    %106 = arith.mulf %105, %103 : vector<8x32xf32>
    %107 = arith.mulf %95, %72 : vector<8x32xf32>
    %108 = arith.addf %106, %107 : vector<8x32xf32>
    %c2_i32 = arith.constant 2 : i32
    %109 = arith.truncf %108 : vector<8x32xf32> to vector<8x32xbf16>
    %c0_36 = arith.constant 0 : index
    %c0_37 = arith.constant 0 : index
    %110 = vector.load %arg4[%c0_36, %c0_37] : memref<32x384xbf16, #tpu.memory_space<vmem>>, vector<32x384xbf16>
    %cst_38 = arith.constant dense<0.000000e+00> : vector<8x384xf32>
    %111 = tpu.matmul %109, %110, %cst_38 {dimension_numbers = #tpu.dot_dimension_numbers<[1], [0], [0], [1], [0, 0, 1, 1], [], []>} : vector<8x32xbf16>, vector<32x384xbf16>, vector<8x384xf32> -> vector<8x384xf32>
    %112 = arith.index_cast %c2_i32 : i32 to index
    %c0_39 = arith.constant 0 : index
    %c0_40 = arith.constant 0 : index
    %113 = vector.load %arg10[%112, %c0_39, %c0_40] : memref<8x8x32xf32, #tpu.memory_space<vmem>>, vector<1x8x32xf32>
    %114 = vector.shape_cast %113 : vector<1x8x32xf32> to vector<8x32xf32>
    %115 = vector.extract_strided_slice %111 {offsets = [0, 0], sizes = [8, 32], strides = [1, 1]} : vector<8x384xf32> to vector<8x32xf32>
    %116 = arith.addf %114, %115 : vector<8x32xf32>
    %117 = arith.negf %116 : vector<8x32xf32>
    %118 = math.exp %117 : vector<8x32xf32>
    %cst_41 = arith.constant 1.000000e+00 : f32
    %119 = vector.broadcast %cst_41 : f32 to vector<8x32xf32>
    %120 = arith.addf %119, %118 : vector<8x32xf32>
    %121 = arith.divf %119, %120 : vector<8x32xf32>
    %122 = arith.index_cast %c2_i32 : i32 to index
    %c0_42 = arith.constant 0 : index
    %c0_43 = arith.constant 0 : index
    %123 = vector.load %arg11[%122, %c0_42, %c0_43] : memref<8x8x32xf32, #tpu.memory_space<vmem>>, vector<1x8x32xf32>
    %124 = vector.shape_cast %123 : vector<1x8x32xf32> to vector<8x32xf32>
    %125 = vector.extract_strided_slice %111 {offsets = [0, 128], sizes = [8, 32], strides = [1, 1]} : vector<8x384xf32> to vector<8x32xf32>
    %126 = arith.addf %124, %125 : vector<8x32xf32>
    %127 = arith.negf %126 : vector<8x32xf32>
    %128 = math.exp %127 : vector<8x32xf32>
    %cst_44 = arith.constant 1.000000e+00 : f32
    %129 = vector.broadcast %cst_44 : f32 to vector<8x32xf32>
    %130 = arith.addf %129, %128 : vector<8x32xf32>
    %131 = arith.divf %129, %130 : vector<8x32xf32>
    %132 = arith.index_cast %c2_i32 : i32 to index
    %c0_45 = arith.constant 0 : index
    %c0_46 = arith.constant 0 : index
    %133 = vector.load %arg12[%132, %c0_45, %c0_46] : memref<8x8x32xf32, #tpu.memory_space<vmem>>, vector<1x8x32xf32>
    %134 = vector.shape_cast %133 : vector<1x8x32xf32> to vector<8x32xf32>
    %135 = vector.extract_strided_slice %111 {offsets = [0, 256], sizes = [8, 32], strides = [1, 1]} : vector<8x384xf32> to vector<8x32xf32>
    %136 = arith.addf %135, %35 : vector<8x32xf32>
    %137 = arith.mulf %121, %136 : vector<8x32xf32>
    %138 = arith.addf %134, %137 : vector<8x32xf32>
    %139 = math.tanh %138 : vector<8x32xf32>
    %cst_47 = arith.constant 1.000000e+00 : f32
    %140 = vector.broadcast %cst_47 : f32 to vector<8x32xf32>
    %141 = arith.subf %140, %131 : vector<8x32xf32>
    %142 = arith.mulf %141, %139 : vector<8x32xf32>
    %143 = arith.mulf %131, %108 : vector<8x32xf32>
    %144 = arith.addf %142, %143 : vector<8x32xf32>
    %c3_i32 = arith.constant 3 : i32
    %145 = arith.truncf %144 : vector<8x32xf32> to vector<8x32xbf16>
    %c0_48 = arith.constant 0 : index
    %c0_49 = arith.constant 0 : index
    %146 = vector.load %arg4[%c0_48, %c0_49] : memref<32x384xbf16, #tpu.memory_space<vmem>>, vector<32x384xbf16>
    %cst_50 = arith.constant dense<0.000000e+00> : vector<8x384xf32>
    %147 = tpu.matmul %145, %146, %cst_50 {dimension_numbers = #tpu.dot_dimension_numbers<[1], [0], [0], [1], [0, 0, 1, 1], [], []>} : vector<8x32xbf16>, vector<32x384xbf16>, vector<8x384xf32> -> vector<8x384xf32>
    %148 = arith.index_cast %c3_i32 : i32 to index
    %c0_51 = arith.constant 0 : index
    %c0_52 = arith.constant 0 : index
    %149 = vector.load %arg10[%148, %c0_51, %c0_52] : memref<8x8x32xf32, #tpu.memory_space<vmem>>, vector<1x8x32xf32>
    %150 = vector.shape_cast %149 : vector<1x8x32xf32> to vector<8x32xf32>
    %151 = vector.extract_strided_slice %147 {offsets = [0, 0], sizes = [8, 32], strides = [1, 1]} : vector<8x384xf32> to vector<8x32xf32>
    %152 = arith.addf %150, %151 : vector<8x32xf32>
    %153 = arith.negf %152 : vector<8x32xf32>
    %154 = math.exp %153 : vector<8x32xf32>
    %cst_53 = arith.constant 1.000000e+00 : f32
    %155 = vector.broadcast %cst_53 : f32 to vector<8x32xf32>
    %156 = arith.addf %155, %154 : vector<8x32xf32>
    %157 = arith.divf %155, %156 : vector<8x32xf32>
    %158 = arith.index_cast %c3_i32 : i32 to index
    %c0_54 = arith.constant 0 : index
    %c0_55 = arith.constant 0 : index
    %159 = vector.load %arg11[%158, %c0_54, %c0_55] : memref<8x8x32xf32, #tpu.memory_space<vmem>>, vector<1x8x32xf32>
    %160 = vector.shape_cast %159 : vector<1x8x32xf32> to vector<8x32xf32>
    %161 = vector.extract_strided_slice %147 {offsets = [0, 128], sizes = [8, 32], strides = [1, 1]} : vector<8x384xf32> to vector<8x32xf32>
    %162 = arith.addf %160, %161 : vector<8x32xf32>
    %163 = arith.negf %162 : vector<8x32xf32>
    %164 = math.exp %163 : vector<8x32xf32>
    %cst_56 = arith.constant 1.000000e+00 : f32
    %165 = vector.broadcast %cst_56 : f32 to vector<8x32xf32>
    %166 = arith.addf %165, %164 : vector<8x32xf32>
    %167 = arith.divf %165, %166 : vector<8x32xf32>
    %168 = arith.index_cast %c3_i32 : i32 to index
    %c0_57 = arith.constant 0 : index
    %c0_58 = arith.constant 0 : index
    %169 = vector.load %arg12[%168, %c0_57, %c0_58] : memref<8x8x32xf32, #tpu.memory_space<vmem>>, vector<1x8x32xf32>
    %170 = vector.shape_cast %169 : vector<1x8x32xf32> to vector<8x32xf32>
    %171 = vector.extract_strided_slice %147 {offsets = [0, 256], sizes = [8, 32], strides = [1, 1]} : vector<8x384xf32> to vector<8x32xf32>
    %172 = arith.addf %171, %35 : vector<8x32xf32>
    %173 = arith.mulf %157, %172 : vector<8x32xf32>
    %174 = arith.addf %170, %173 : vector<8x32xf32>
    %175 = math.tanh %174 : vector<8x32xf32>
    %cst_59 = arith.constant 1.000000e+00 : f32
    %176 = vector.broadcast %cst_59 : f32 to vector<8x32xf32>
    %177 = arith.subf %176, %167 : vector<8x32xf32>
    %178 = arith.mulf %177, %175 : vector<8x32xf32>
    %179 = arith.mulf %167, %144 : vector<8x32xf32>
    %180 = arith.addf %178, %179 : vector<8x32xf32>
    %c4_i32 = arith.constant 4 : i32
    %181 = arith.truncf %180 : vector<8x32xf32> to vector<8x32xbf16>
    %c0_60 = arith.constant 0 : index
    %c0_61 = arith.constant 0 : index
    %182 = vector.load %arg4[%c0_60, %c0_61] : memref<32x384xbf16, #tpu.memory_space<vmem>>, vector<32x384xbf16>
    %cst_62 = arith.constant dense<0.000000e+00> : vector<8x384xf32>
    %183 = tpu.matmul %181, %182, %cst_62 {dimension_numbers = #tpu.dot_dimension_numbers<[1], [0], [0], [1], [0, 0, 1, 1], [], []>} : vector<8x32xbf16>, vector<32x384xbf16>, vector<8x384xf32> -> vector<8x384xf32>
    %184 = arith.index_cast %c4_i32 : i32 to index
    %c0_63 = arith.constant 0 : index
    %c0_64 = arith.constant 0 : index
    %185 = vector.load %arg10[%184, %c0_63, %c0_64] : memref<8x8x32xf32, #tpu.memory_space<vmem>>, vector<1x8x32xf32>
    %186 = vector.shape_cast %185 : vector<1x8x32xf32> to vector<8x32xf32>
    %187 = vector.extract_strided_slice %183 {offsets = [0, 0], sizes = [8, 32], strides = [1, 1]} : vector<8x384xf32> to vector<8x32xf32>
    %188 = arith.addf %186, %187 : vector<8x32xf32>
    %189 = arith.negf %188 : vector<8x32xf32>
    %190 = math.exp %189 : vector<8x32xf32>
    %cst_65 = arith.constant 1.000000e+00 : f32
    %191 = vector.broadcast %cst_65 : f32 to vector<8x32xf32>
    %192 = arith.addf %191, %190 : vector<8x32xf32>
    %193 = arith.divf %191, %192 : vector<8x32xf32>
    %194 = arith.index_cast %c4_i32 : i32 to index
    %c0_66 = arith.constant 0 : index
    %c0_67 = arith.constant 0 : index
    %195 = vector.load %arg11[%194, %c0_66, %c0_67] : memref<8x8x32xf32, #tpu.memory_space<vmem>>, vector<1x8x32xf32>
    %196 = vector.shape_cast %195 : vector<1x8x32xf32> to vector<8x32xf32>
    %197 = vector.extract_strided_slice %183 {offsets = [0, 128], sizes = [8, 32], strides = [1, 1]} : vector<8x384xf32> to vector<8x32xf32>
    %198 = arith.addf %196, %197 : vector<8x32xf32>
    %199 = arith.negf %198 : vector<8x32xf32>
    %200 = math.exp %199 : vector<8x32xf32>
    %cst_68 = arith.constant 1.000000e+00 : f32
    %201 = vector.broadcast %cst_68 : f32 to vector<8x32xf32>
    %202 = arith.addf %201, %200 : vector<8x32xf32>
    %203 = arith.divf %201, %202 : vector<8x32xf32>
    %204 = arith.index_cast %c4_i32 : i32 to index
    %c0_69 = arith.constant 0 : index
    %c0_70 = arith.constant 0 : index
    %205 = vector.load %arg12[%204, %c0_69, %c0_70] : memref<8x8x32xf32, #tpu.memory_space<vmem>>, vector<1x8x32xf32>
    %206 = vector.shape_cast %205 : vector<1x8x32xf32> to vector<8x32xf32>
    %207 = vector.extract_strided_slice %183 {offsets = [0, 256], sizes = [8, 32], strides = [1, 1]} : vector<8x384xf32> to vector<8x32xf32>
    %208 = arith.addf %207, %35 : vector<8x32xf32>
    %209 = arith.mulf %193, %208 : vector<8x32xf32>
    %210 = arith.addf %206, %209 : vector<8x32xf32>
    %211 = math.tanh %210 : vector<8x32xf32>
    %cst_71 = arith.constant 1.000000e+00 : f32
    %212 = vector.broadcast %cst_71 : f32 to vector<8x32xf32>
    %213 = arith.subf %212, %203 : vector<8x32xf32>
    %214 = arith.mulf %213, %211 : vector<8x32xf32>
    %215 = arith.mulf %203, %180 : vector<8x32xf32>
    %216 = arith.addf %214, %215 : vector<8x32xf32>
    %c5_i32 = arith.constant 5 : i32
    %217 = arith.truncf %216 : vector<8x32xf32> to vector<8x32xbf16>
    %c0_72 = arith.constant 0 : index
    %c0_73 = arith.constant 0 : index
    %218 = vector.load %arg4[%c0_72, %c0_73] : memref<32x384xbf16, #tpu.memory_space<vmem>>, vector<32x384xbf16>
    %cst_74 = arith.constant dense<0.000000e+00> : vector<8x384xf32>
    %219 = tpu.matmul %217, %218, %cst_74 {dimension_numbers = #tpu.dot_dimension_numbers<[1], [0], [0], [1], [0, 0, 1, 1], [], []>} : vector<8x32xbf16>, vector<32x384xbf16>, vector<8x384xf32> -> vector<8x384xf32>
    %220 = arith.index_cast %c5_i32 : i32 to index
    %c0_75 = arith.constant 0 : index
    %c0_76 = arith.constant 0 : index
    %221 = vector.load %arg10[%220, %c0_75, %c0_76] : memref<8x8x32xf32, #tpu.memory_space<vmem>>, vector<1x8x32xf32>
    %222 = vector.shape_cast %221 : vector<1x8x32xf32> to vector<8x32xf32>
    %223 = vector.extract_strided_slice %219 {offsets = [0, 0], sizes = [8, 32], strides = [1, 1]} : vector<8x384xf32> to vector<8x32xf32>
    %224 = arith.addf %222, %223 : vector<8x32xf32>
    %225 = arith.negf %224 : vector<8x32xf32>
    %226 = math.exp %225 : vector<8x32xf32>
    %cst_77 = arith.constant 1.000000e+00 : f32
    %227 = vector.broadcast %cst_77 : f32 to vector<8x32xf32>
    %228 = arith.addf %227, %226 : vector<8x32xf32>
    %229 = arith.divf %227, %228 : vector<8x32xf32>
    %230 = arith.index_cast %c5_i32 : i32 to index
    %c0_78 = arith.constant 0 : index
    %c0_79 = arith.constant 0 : index
    %231 = vector.load %arg11[%230, %c0_78, %c0_79] : memref<8x8x32xf32, #tpu.memory_space<vmem>>, vector<1x8x32xf32>
    %232 = vector.shape_cast %231 : vector<1x8x32xf32> to vector<8x32xf32>
    %233 = vector.extract_strided_slice %219 {offsets = [0, 128], sizes = [8, 32], strides = [1, 1]} : vector<8x384xf32> to vector<8x32xf32>
    %234 = arith.addf %232, %233 : vector<8x32xf32>
    %235 = arith.negf %234 : vector<8x32xf32>
    %236 = math.exp %235 : vector<8x32xf32>
    %cst_80 = arith.constant 1.000000e+00 : f32
    %237 = vector.broadcast %cst_80 : f32 to vector<8x32xf32>
    %238 = arith.addf %237, %236 : vector<8x32xf32>
    %239 = arith.divf %237, %238 : vector<8x32xf32>
    %240 = arith.index_cast %c5_i32 : i32 to index
    %c0_81 = arith.constant 0 : index
    %c0_82 = arith.constant 0 : index
    %241 = vector.load %arg12[%240, %c0_81, %c0_82] : memref<8x8x32xf32, #tpu.memory_space<vmem>>, vector<1x8x32xf32>
    %242 = vector.shape_cast %241 : vector<1x8x32xf32> to vector<8x32xf32>
    %243 = vector.extract_strided_slice %219 {offsets = [0, 256], sizes = [8, 32], strides = [1, 1]} : vector<8x384xf32> to vector<8x32xf32>
    %244 = arith.addf %243, %35 : vector<8x32xf32>
    %245 = arith.mulf %229, %244 : vector<8x32xf32>
    %246 = arith.addf %242, %245 : vector<8x32xf32>
    %247 = math.tanh %246 : vector<8x32xf32>
    %cst_83 = arith.constant 1.000000e+00 : f32
    %248 = vector.broadcast %cst_83 : f32 to vector<8x32xf32>
    %249 = arith.subf %248, %239 : vector<8x32xf32>
    %250 = arith.mulf %249, %247 : vector<8x32xf32>
    %251 = arith.mulf %239, %216 : vector<8x32xf32>
    %252 = arith.addf %250, %251 : vector<8x32xf32>
    %c6_i32 = arith.constant 6 : i32
    %253 = arith.truncf %252 : vector<8x32xf32> to vector<8x32xbf16>
    %c0_84 = arith.constant 0 : index
    %c0_85 = arith.constant 0 : index
    %254 = vector.load %arg4[%c0_84, %c0_85] : memref<32x384xbf16, #tpu.memory_space<vmem>>, vector<32x384xbf16>
    %cst_86 = arith.constant dense<0.000000e+00> : vector<8x384xf32>
    %255 = tpu.matmul %253, %254, %cst_86 {dimension_numbers = #tpu.dot_dimension_numbers<[1], [0], [0], [1], [0, 0, 1, 1], [], []>} : vector<8x32xbf16>, vector<32x384xbf16>, vector<8x384xf32> -> vector<8x384xf32>
    %256 = arith.index_cast %c6_i32 : i32 to index
    %c0_87 = arith.constant 0 : index
    %c0_88 = arith.constant 0 : index
    %257 = vector.load %arg10[%256, %c0_87, %c0_88] : memref<8x8x32xf32, #tpu.memory_space<vmem>>, vector<1x8x32xf32>
    %258 = vector.shape_cast %257 : vector<1x8x32xf32> to vector<8x32xf32>
    %259 = vector.extract_strided_slice %255 {offsets = [0, 0], sizes = [8, 32], strides = [1, 1]} : vector<8x384xf32> to vector<8x32xf32>
    %260 = arith.addf %258, %259 : vector<8x32xf32>
    %261 = arith.negf %260 : vector<8x32xf32>
    %262 = math.exp %261 : vector<8x32xf32>
    %cst_89 = arith.constant 1.000000e+00 : f32
    %263 = vector.broadcast %cst_89 : f32 to vector<8x32xf32>
    %264 = arith.addf %263, %262 : vector<8x32xf32>
    %265 = arith.divf %263, %264 : vector<8x32xf32>
    %266 = arith.index_cast %c6_i32 : i32 to index
    %c0_90 = arith.constant 0 : index
    %c0_91 = arith.constant 0 : index
    %267 = vector.load %arg11[%266, %c0_90, %c0_91] : memref<8x8x32xf32, #tpu.memory_space<vmem>>, vector<1x8x32xf32>
    %268 = vector.shape_cast %267 : vector<1x8x32xf32> to vector<8x32xf32>
    %269 = vector.extract_strided_slice %255 {offsets = [0, 128], sizes = [8, 32], strides = [1, 1]} : vector<8x384xf32> to vector<8x32xf32>
    %270 = arith.addf %268, %269 : vector<8x32xf32>
    %271 = arith.negf %270 : vector<8x32xf32>
    %272 = math.exp %271 : vector<8x32xf32>
    %cst_92 = arith.constant 1.000000e+00 : f32
    %273 = vector.broadcast %cst_92 : f32 to vector<8x32xf32>
    %274 = arith.addf %273, %272 : vector<8x32xf32>
    %275 = arith.divf %273, %274 : vector<8x32xf32>
    %276 = arith.index_cast %c6_i32 : i32 to index
    %c0_93 = arith.constant 0 : index
    %c0_94 = arith.constant 0 : index
    %277 = vector.load %arg12[%276, %c0_93, %c0_94] : memref<8x8x32xf32, #tpu.memory_space<vmem>>, vector<1x8x32xf32>
    %278 = vector.shape_cast %277 : vector<1x8x32xf32> to vector<8x32xf32>
    %279 = vector.extract_strided_slice %255 {offsets = [0, 256], sizes = [8, 32], strides = [1, 1]} : vector<8x384xf32> to vector<8x32xf32>
    %280 = arith.addf %279, %35 : vector<8x32xf32>
    %281 = arith.mulf %265, %280 : vector<8x32xf32>
    %282 = arith.addf %278, %281 : vector<8x32xf32>
    %283 = math.tanh %282 : vector<8x32xf32>
    %cst_95 = arith.constant 1.000000e+00 : f32
    %284 = vector.broadcast %cst_95 : f32 to vector<8x32xf32>
    %285 = arith.subf %284, %275 : vector<8x32xf32>
    %286 = arith.mulf %285, %283 : vector<8x32xf32>
    %287 = arith.mulf %275, %252 : vector<8x32xf32>
    %288 = arith.addf %286, %287 : vector<8x32xf32>
    %c7_i32 = arith.constant 7 : i32
    %289 = arith.truncf %288 : vector<8x32xf32> to vector<8x32xbf16>
    %c0_96 = arith.constant 0 : index
    %c0_97 = arith.constant 0 : index
    %290 = vector.load %arg4[%c0_96, %c0_97] : memref<32x384xbf16, #tpu.memory_space<vmem>>, vector<32x384xbf16>
    %cst_98 = arith.constant dense<0.000000e+00> : vector<8x384xf32>
    %291 = tpu.matmul %289, %290, %cst_98 {dimension_numbers = #tpu.dot_dimension_numbers<[1], [0], [0], [1], [0, 0, 1, 1], [], []>} : vector<8x32xbf16>, vector<32x384xbf16>, vector<8x384xf32> -> vector<8x384xf32>
    %292 = arith.index_cast %c7_i32 : i32 to index
    %c0_99 = arith.constant 0 : index
    %c0_100 = arith.constant 0 : index
    %293 = vector.load %arg10[%292, %c0_99, %c0_100] : memref<8x8x32xf32, #tpu.memory_space<vmem>>, vector<1x8x32xf32>
    %294 = vector.shape_cast %293 : vector<1x8x32xf32> to vector<8x32xf32>
    %295 = vector.extract_strided_slice %291 {offsets = [0, 0], sizes = [8, 32], strides = [1, 1]} : vector<8x384xf32> to vector<8x32xf32>
    %296 = arith.addf %294, %295 : vector<8x32xf32>
    %297 = arith.negf %296 : vector<8x32xf32>
    %298 = math.exp %297 : vector<8x32xf32>
    %cst_101 = arith.constant 1.000000e+00 : f32
    %299 = vector.broadcast %cst_101 : f32 to vector<8x32xf32>
    %300 = arith.addf %299, %298 : vector<8x32xf32>
    %301 = arith.divf %299, %300 : vector<8x32xf32>
    %302 = arith.index_cast %c7_i32 : i32 to index
    %c0_102 = arith.constant 0 : index
    %c0_103 = arith.constant 0 : index
    %303 = vector.load %arg11[%302, %c0_102, %c0_103] : memref<8x8x32xf32, #tpu.memory_space<vmem>>, vector<1x8x32xf32>
    %304 = vector.shape_cast %303 : vector<1x8x32xf32> to vector<8x32xf32>
    %305 = vector.extract_strided_slice %291 {offsets = [0, 128], sizes = [8, 32], strides = [1, 1]} : vector<8x384xf32> to vector<8x32xf32>
    %306 = arith.addf %304, %305 : vector<8x32xf32>
    %307 = arith.negf %306 : vector<8x32xf32>
    %308 = math.exp %307 : vector<8x32xf32>
    %cst_104 = arith.constant 1.000000e+00 : f32
    %309 = vector.broadcast %cst_104 : f32 to vector<8x32xf32>
    %310 = arith.addf %309, %308 : vector<8x32xf32>
    %311 = arith.divf %309, %310 : vector<8x32xf32>
    %312 = arith.index_cast %c7_i32 : i32 to index
    %c0_105 = arith.constant 0 : index
    %c0_106 = arith.constant 0 : index
    %313 = vector.load %arg12[%312, %c0_105, %c0_106] : memref<8x8x32xf32, #tpu.memory_space<vmem>>, vector<1x8x32xf32>
    %314 = vector.shape_cast %313 : vector<1x8x32xf32> to vector<8x32xf32>
    %315 = vector.extract_strided_slice %291 {offsets = [0, 256], sizes = [8, 32], strides = [1, 1]} : vector<8x384xf32> to vector<8x32xf32>
    %316 = arith.addf %315, %35 : vector<8x32xf32>
    %317 = arith.mulf %301, %316 : vector<8x32xf32>
    %318 = arith.addf %314, %317 : vector<8x32xf32>
    %319 = math.tanh %318 : vector<8x32xf32>
    %cst_107 = arith.constant 1.000000e+00 : f32
    %320 = vector.broadcast %cst_107 : f32 to vector<8x32xf32>
    %321 = arith.subf %320, %311 : vector<8x32xf32>
    %322 = arith.mulf %321, %319 : vector<8x32xf32>
    %323 = arith.mulf %311, %288 : vector<8x32xf32>
    %324 = arith.addf %322, %323 : vector<8x32xf32>
    %c8_i32 = arith.constant 8 : i32
    %325 = arith.truncf %324 : vector<8x32xf32> to vector<8x32xbf16>
    %c0_108 = arith.constant 0 : index
    %c0_109 = arith.constant 0 : index
    %326 = vector.load %arg5[%c0_108, %c0_109] : memref<32x128xbf16, #tpu.memory_space<vmem>>, vector<32x128xbf16>
    %cst_110 = arith.constant dense<0.000000e+00> : vector<8x128xf32>
    %327 = tpu.matmul %325, %326, %cst_110 {dimension_numbers = #tpu.dot_dimension_numbers<[1], [0], [0], [1], [0, 0, 1, 1], [], []>} : vector<8x32xbf16>, vector<32x128xbf16>, vector<8x128xf32> -> vector<8x128xf32>
    %c0_111 = arith.constant 0 : index
    %c0_112 = arith.constant 0 : index
    %328 = vector.load %arg2[%c0_111, %c0_112] : memref<8x4xf32, #tpu.memory_space<vmem>>, vector<8x4xf32>
    %329 = arith.truncf %328 : vector<8x4xf32> to vector<8x4xbf16>
    %c0_113 = arith.constant 0 : index
    %c0_114 = arith.constant 0 : index
    %330 = vector.load %arg6[%c0_113, %c0_114] : memref<4x128xbf16, #tpu.memory_space<vmem>>, vector<4x128xbf16>
    %cst_115 = arith.constant dense<0.000000e+00> : vector<8x128xf32>
    %331 = tpu.matmul %329, %330, %cst_115 {dimension_numbers = #tpu.dot_dimension_numbers<[1], [0], [0], [1], [0, 0, 1, 1], [], []>} : vector<8x4xbf16>, vector<4x128xbf16>, vector<8x128xf32> -> vector<8x128xf32>
    %332 = arith.addf %327, %331 : vector<8x128xf32>
    %c0_116 = arith.constant 0 : index
    %c0_117 = arith.constant 0 : index
    %333 = vector.load %arg8[%c0_116, %c0_117] : memref<2x128xf32, #tpu.memory_space<vmem>>, vector<1x128xf32>
    %334 = vector.broadcast %333 : vector<1x128xf32> to vector<8x128xf32>
    %335 = arith.addf %332, %334 : vector<8x128xf32>
    %cst_118 = arith.constant 0.000000e+00 : f32
    %336 = vector.broadcast %cst_118 : f32 to vector<8x128xf32>
    %337 = arith.maximumf %335, %336 : vector<8x128xf32>
    %338 = arith.truncf %337 : vector<8x128xf32> to vector<8x128xbf16>
    %c0_119 = arith.constant 0 : index
    %c0_120 = arith.constant 0 : index
    %339 = vector.load %arg7[%c0_119, %c0_120] : memref<128x128xbf16, #tpu.memory_space<vmem>>, vector<128x128xbf16>
    %cst_121 = arith.constant dense<0.000000e+00> : vector<8x128xf32>
    %340 = tpu.matmul %338, %339, %cst_121 {dimension_numbers = #tpu.dot_dimension_numbers<[1], [0], [0], [1], [0, 0, 1, 1], [], []>} : vector<8x128xbf16>, vector<128x128xbf16>, vector<8x128xf32> -> vector<8x128xf32>
    %c1 = arith.constant 1 : index
    %c0_122 = arith.constant 0 : index
    %341 = vector.load %arg8[%c1, %c0_122] : memref<2x128xf32, #tpu.memory_space<vmem>>, vector<1x128xf32>
    %342 = vector.broadcast %341 : vector<1x128xf32> to vector<8x128xf32>
    %343 = arith.addf %340, %342 : vector<8x128xf32>
    %cst_123 = arith.constant 0.000000e+00 : f32
    %344 = vector.broadcast %cst_123 : f32 to vector<8x128xf32>
    %345 = arith.maximumf %343, %344 : vector<8x128xf32>
    %c0_124 = arith.constant 0 : index
    %c0_125 = arith.constant 0 : index
    %346 = vector.load %arg9[%c0_124, %c0_125] : memref<8x128xf32, #tpu.memory_space<vmem>>, vector<8x128xf32>
    tpu.vector_store %arg9[%c0_124, %c0_125], %345 {strides = array<i32>} : memref<8x128xf32, #tpu.memory_space<vmem>>, vector<8x128xf32>,
    return
  }
  func.func @transform_0(%arg0: i32) -> (i32, i32) {
    %c0_i32 = arith.constant 0 : i32
    %c0_i32_0 = arith.constant 0 : i32
    return %c0_i32, %arg0 : i32, i32
  }
  func.func @transform_1(%arg0: i32) -> (i32, i32) {
    %c0_i32 = arith.constant 0 : i32
    %c0_i32_0 = arith.constant 0 : i32
    return %arg0, %c0_i32 : i32, i32
  }
  func.func @transform_2(%arg0: i32) -> (i32, i32) {
    %c0_i32 = arith.constant 0 : i32
    %c0_i32_0 = arith.constant 0 : i32
    %c0_i32_1 = arith.constant 0 : i32
    return %c0_i32, %c0_i32_0 : i32, i32
  }
  func.func @transform_3(%arg0: i32) -> (i32, i32) {
    %c0_i32 = arith.constant 0 : i32
    %c0_i32_0 = arith.constant 0 : i32
    %c0_i32_1 = arith.constant 0 : i32
    return %c0_i32, %c0_i32_0 : i32, i32
  }
  func.func @transform_4(%arg0: i32) -> (i32, i32) {
    %c0_i32 = arith.constant 0 : i32
    %c0_i32_0 = arith.constant 0 : i32
    %c0_i32_1 = arith.constant 0 : i32
    return %c0_i32, %c0_i32_0 : i32, i32
  }
  func.func @transform_5(%arg0: i32) -> (i32, i32) {
    %c0_i32 = arith.constant 0 : i32
    %c0_i32_0 = arith.constant 0 : i32
    %c0_i32_1 = arith.constant 0 : i32
    return %c0_i32, %c0_i32_0 : i32, i32
  }
  func.func @transform_6(%arg0: i32) -> (i32, i32) {
    %c0_i32 = arith.constant 0 : i32
    %c0_i32_0 = arith.constant 0 : i32
    %c0_i32_1 = arith.constant 0 : i32
    return %c0_i32, %c0_i32_0 : i32, i32
  }
  func.func @transform_7(%arg0: i32) -> (i32, i32) {
    %c0_i32 = arith.constant 0 : i32
    %c0_i32_0 = arith.constant 0 : i32
    %c0_i32_1 = arith.constant 0 : i32
    return %c0_i32, %c0_i32_0 : i32, i32
  }
  func.func @transform_8(%arg0: i32) -> (i32, i32) {
    %c0_i32 = arith.constant 0 : i32
    %c0_i32_0 = arith.constant 0 : i32
    return %arg0, %c0_i32 : i32, i32
  }
}

</mosaic_0001>

<bundles_post_ra>
// kernel: tpu_custom_call.1
= control target key start
LH: loop header
LB: loop body
LE: loop exit
PB: predicated region body
PF: predicated region fallthrough
CT: control target
= control target key end

     0   :  { %13 = vsyncpa [#allocation6], 0  ;;  %s1847_s0 = inlined_call_operand.vmem [shape: f32[8,8], index: 0, kind: input, shape index: {}]   ;;  %s1848_s1 = inlined_call_operand.vmem [shape: f32[8,4], index: 1, kind: input, shape index: {}]   ;;  %s1849_s2 = inlined_call_operand.hbm [shape: f32[8,32], index: 2, kind: input, shape index: {}]   ;;  %s1850_s3 = inlined_call_operand.hbm [shape: bf16[32,384], index: 3, kind: input, shape index: {}]   ;;  %s1851_s4 = inlined_call_operand.hbm [shape: bf16[32,128], index: 4, kind: input, shape index: {}]   ;;  %s1852_s5 = inlined_call_operand.vmem [shape: bf16[4,128], index: 5, kind: input, shape index: {}]   ;;  %s1853_s6 = inlined_call_operand.hbm [shape: bf16[128,128], index: 6, kind: input, shape index: {}]   ;;  %s1854_s7 = inlined_call_operand.vmem [shape: f32[2,128], index: 7, kind: input, shape index: {}]   ;;  %s1855_s8 = inlined_call_operand.hbm [shape: f32[8,128], index: 8, kind: output, shape index: {}]  }
   0x1   :  { %14 = vsyncpa [#allocation9], 0 }
   0x2   :  { %15 = vsyncpa [#allocation12], 0  ;;  %s36_s29 = sshll.u32 %s1850_s3, 4  ;;  %s37_s29 = int_to_ptr.hbm [resolvable:$true] %s36_s29 }
   0x3   :  { %16 = vsyncpa [#allocation7], 0  ;;  %s1546_s30 = smov [#allocation8]   ;;  %s26_s12 = sshll.u32 %s1849_s2, 4  ;;  %s27_s12 = int_to_ptr.hbm [resolvable:$true] %s26_s12 }
   0x4   :  { %s38_s9 = sshll.u32 %s1546_s30, 4  ;;  %s1547_s13 = smov 192   ;;  %s39_s9 = int_to_ptr.vmem [resolvable:$true] %s38_s9 }
   0x5   :  { %s1548_s14 = smov 12   ;;  %s1549_s15 = smov [#allocation5]  }
   0x6   :  { %44 = dma.hbm_to_vmem [thread:$0]  %s37_s29, 768, %s39_s9, [#allocation9], %s1547_s13, %s1547_s13, %s1548_s14  }
   0x7   :  { %s28_s16 = sshll.u32 %s1549_s15, 4  ;;  %s49_s19 = sshll.u32 %s1851_s4, 4  ;;  %s29_s16 = int_to_ptr.vmem [resolvable:$true] %s28_s16  ;;  %s50_s19 = int_to_ptr.hbm [resolvable:$true] %s49_s19 }
   0x8   :  { %31 = dma.hbm_to_vmem [thread:$0]  %s27_s12, 128, %s29_s16, [#allocation6]  }
   0x9   :  { %s1550_s3 = smov [#allocation10]   ;;  %s64_s2 = sshll.u32 %s1853_s6, 4  ;;  %s65_s2 = int_to_ptr.hbm [resolvable:$true] %s64_s2 }
   0xa   :  { %s51_s20 = sshll.u32 %s1550_s3, 4  ;;  %s1551_s23 = smov 64   ;;  %s52_s20 = int_to_ptr.vmem [resolvable:$true] %s51_s20 }
   0xb   :  { %s1552_s24 = smov 4   ;;  %s1553_s25 = smov [#allocation11]  }
   0xc   :  { %57 = dma.hbm_to_vmem [thread:$0]  %s50_s19, 256, %s52_s20, [#allocation9], %s1551_s23, %s1551_s23, %s1552_s24  }
   0xd   :  { %s66_s26 = sshll.u32 %s1553_s25, 4  ;;  %s67_s26 = int_to_ptr.vmem [resolvable:$true] %s66_s26 }
   0xe   :  { %72 = dma.hbm_to_vmem [thread:$0]  %s65_s2, 1024, %s67_s26, [#allocation12], %s1551_s23, %s1551_s23, %s1552_s24  }
   0xf   :  { %1538 = dma.done.wait [#allocation6], 128  }
  0x10   :  { %1539 = vsyncadd [#allocation6], 4294967168 }
  0x11   :  { %1540 = dma.done.wait [#allocation9], 1024  }
  0x12   :  { %1541 = vsyncadd [#allocation9], 4294966272 }
  0x13   :  { %1542 = dma.done.wait [#allocation12], 1024  }
  0x14   :  { %1543 = vsyncadd [#allocation12], 4294966272  ;;  %v94_v0 = vlaneseq  ;;  %v1218_v2 = vld [vmem:[#allocation8 + $0x18] sm:$0xf]  ;;  %v1311_v3 = vld [vmem:[#allocation8 + $0x20] sm:$0xf0] }
  0x15   :  { %v1310_v4 = vld [vmem:[#allocation8 + $0x1c] sm:$0xf]  ;;  %v1613_v5 = vor.u32 %v1311_v3, %v1218_v2  ;;  %v1220_v6 = vld [vmem:[#allocation8 + $0x24] sm:$0xf0]  ;;  %v1206_v8 = vld [vmem:[#allocation8] sm:$0xf] }
  0x16   :  { %v95_v1 = vshrl.u32 %v94_v0, 7  ;;  %v1618_v7 = vld [vmem:[%s1847_s0] sm:$0xff]  ;;  %v1620_v9 = vor.u32 %v1310_v4, %v1220_v6  ;;  %v1308_v11 = vld [vmem:[#allocation8 + $0x8] sm:$0xf0]  ;;  %v1307_v12 = vld [vmem:[#allocation8 + $0x4] sm:$0xf] }
  0x17   :  { %v93_v10 = vperm.slane %v1618_v7, 0  ;;  %279 = vmatpush.bf16.msra.mxu0 %v1613_v5  ;;  %v1624_v13 = vor.u32 %v1308_v11, %v1206_v8  ;;  %v1208_v14 = vld [vmem:[#allocation8 + $0xc] sm:$0xf0]  ;;  %v1226_v15 = vld [vmem:[#allocation8 + $0x20] sm:$0xf]  ;;  %470 = vmatpush.bf16.msra.mxu2 %v1613_v5  ;;  %v100_v22 = vperm.slane %v1618_v7, 1 }
  0x18   :  { %1333 = vset.pattern.permute.xlu0 %v95_v1  ;;  %1334 = vset.pattern.permute.xlu1 %v95_v1  ;;  %v1312_v16 = vld [vmem:[#allocation8 + $0x28] sm:$0xf0]  ;;  %v1628_v17 = vor.u32 %v1307_v12, %v1208_v14  ;;  %v1214_v19 = vld [vmem:[#allocation8 + $0x8] sm:$0xf]  ;;  %v1309_v20 = vld [vmem:[#allocation8 + $0x10] sm:$0xf0] }
  0x19   :  { %1335 = vset.pattern.permute.xlu2 %v95_v1  ;;  %292 = vmatpush.bf16.msra.mxu1 %v1620_v9  ;;  %v1630_v18 = vor.u32 %v1312_v16, %v1226_v15  ;;  %v1633_v21 = vor.u32 %v1309_v20, %v1214_v19  ;;  %v1554_v23 = vmov 0   ;;  %v135_v24 = vperm.slane %v1618_v7, 6  ;;  %v149_v25 = vld [vmem:[#allocation5] sm:$0xff]  ;;  %s1555_s10 = smov [#allocation13]   ;;  %s1192_s14 = sshll.u32 %s1855_s8, 4  ;;  %s1193_s14 = int_to_ptr.hbm [resolvable:$true] %s1192_s14 }
  0x1a   :  { %v1655_v26 = vperm.slane %v149_v25, 0  ;;  %v1657_v27 = vperm.slane %v149_v25, 1  ;;  %v1659_v28 = vperm.slane %v149_v25, 2  ;;  %v1661_v29 = vperm.slane %v149_v25, 3  ;;  %s1190_s11 = sshll.u32 %s1555_s10, 4  ;;  %s1191_s11 = int_to_ptr.vmem [resolvable:$true] %s1190_s11 }
  0x1b   :  { %305 = vmatpush.bf16.msra.mxu3 %v1630_v18  ;;  %280 = vmatpush.bf16.msra.mxu0 %v1624_v13  ;;  %v1663_v30 = vperm.slane %v149_v25, 4  ;;  %v1665_v31 = vperm.slane %v149_v25, 5  ;;  %vm168_vm0 = vcmask 261120   ;;  %v1694_v12 = vperm.slane %v149_v25, 6 }
  0x1c   :  { %471 = vmatpush.bf16.msra.mxu2 %v1624_v13 }
  0x1d   :  { %293 = vmatpush.bf16.msra.mxu1 %v1628_v17 }
  0x1e   :  { %281 = vmatmul.bf16.vlgmr.msra.gmra.mxu0 %v1554_v23 }
  0x1f   :  { %386 = vmatpush.bf16.msrb.mxu0 %v1620_v9  ;;  %306 = vmatpush.bf16.msra.mxu3 %v1633_v21 }
  0x20   :  { %98 = vperm.xlu0 %1333, %v93_v10   ;;  %580 = vmatpush.bf16.msrb.mxu2 %v1620_v9 }
  0x21   :  { %399 = vmatpush.bf16.msrb.mxu1 %v1630_v18 }
  0x22   :  { %294 = vmatmul.bf16.vlgmr.msra.gmra.mxu1 %v1554_v23  ;;  %307 = vmatmul.bf16.vlgmr.msra.gmra.mxu3 %v1554_v23 }
  0x23   :  { %373 = vmatpush.bf16.msrb.mxu3 %v1613_v5  ;;  %387 = vmatpush.bf16.msrb.mxu0 %v1628_v17 }
  0x24   :  { %581 = vmatpush.bf16.msrb.mxu2 %v1628_v17 }
  0x25   :  { %400 = vmatpush.bf16.msrb.mxu1 %v1633_v21 }
  0x27   :  { %496 = vmatpush.bf16.msra.mxu0 %v1630_v18  ;;  %374 = vmatpush.bf16.msrb.mxu3 %v1624_v13 }
  0x28   :  { %105 = vperm.xlu0 %1333, %v100_v22  }
  0x29   :  { %567 = vmatpush.bf16.msra.mxu1 %v1613_v5 }
  0x2b   :  { %483 = vmatpush.bf16.msra.mxu3 %v1620_v9  ;;  %497 = vmatpush.bf16.msra.mxu0 %v1633_v21 }
  0x2d   :  { %568 = vmatpush.bf16.msra.mxu1 %v1624_v13 }
  0x2f   :  { %484 = vmatpush.bf16.msra.mxu3 %v1628_v17 }
  0x30   :  { %140 = vperm.xlu0 %1333, %v135_v24  }
  0x92   :  { %v99_v32 = vpop.permute.xlu0 %98 }
  0x93   :  { %v151_v33 = vmul.f32 %v1655_v26, %v99_v32  ;;  %v178_v34 = vmul.f32 %v1657_v27, %v99_v32  ;;  %v204_v35 = vmul.f32 %v1659_v28, %v99_v32 }
  0x95   :  { %v160_v36 = vadd.f32 %v1661_v29, %v151_v33  ;;  %v187_v37 = vadd.f32 %v1663_v30, %v178_v34  ;;  %v213_v38 = vadd.f32 %v1665_v31, %v204_v35 }
  0x97   :  { %169 = vst.msk [vmem:[#allocation2] sm:$0xff] %vm168_vm0, %v160_v36 }
  0x98   :  { %195 = vst.msk [vmem:[#allocation3] sm:$0xff] %vm168_vm0, %v187_v37 }
  0x99   :  { %221 = vst.msk [vmem:[#allocation4] sm:$0xff] %vm168_vm0, %v213_v38 }
  0x9a   :  { %v106_v39 = vpop.permute.xlu0 %105 }
  0x9b   :  { %v152_v40 = vmul.f32 %v1655_v26, %v106_v39  ;;  %v179_v41 = vmul.f32 %v1657_v27, %v106_v39  ;;  %v205_v42 = vmul.f32 %v1659_v28, %v106_v39  ;;  %v282_v48 = vpop.f32.mrf.mxu0 }
  0x9d   :  { %v161_v43 = vadd.f32 %v1661_v29, %v152_v40  ;;  %v188_v44 = vadd.f32 %v1663_v30, %v179_v41  ;;  %v214_v45 = vadd.f32 %v1665_v31, %v205_v42 }
  0x9e   :  { %v312_v46 = vld [vmem:[#allocation2] sm:$0xff] }
  0x9f   :  { %170 = vst.msk [vmem:[#allocation2 + $0x8] sm:$0xff] %vm168_vm0, %v161_v43  ;;  %v333_v47 = vld [vmem:[#allocation3] sm:$0xff]  ;;  %v313_v50 = vadd.f32 %v312_v46, %v282_v48  ;;  %v295_v51 = vpop.f32.mrf.mxu1 }
  0xa0   :  { %196 = vst.msk [vmem:[#allocation3 + $0x8] sm:$0xff] %vm168_vm0, %v188_v44  ;;  %v334_v55 = vadd.f32 %v333_v47, %v295_v51  ;;  %v354_v37 = vld [vmem:[#allocation4] sm:$0xff] }
  0xa1   :  { %222 = vst.msk [vmem:[#allocation4 + $0x8] sm:$0xff] %vm168_vm0, %v214_v45  ;;  %v1228_v56 = vmul.f32 -1.442695, %v313_v50 }
  0xa2   :  { %v141_v49 = vpop.permute.xlu0 %140  ;;  %v1229_v60 = vmul.f32 -1.442695, %v334_v55 }
  0xa3   :  { %v157_v52 = vmul.f32 %v1655_v26, %v141_v49  ;;  %v184_v53 = vmul.f32 %v1657_v27, %v141_v49  ;;  %v210_v54 = vmul.f32 %v1659_v28, %v141_v49  ;;  %1338 = vpow2.f32 %v1228_v56  ;;  %v284_v61 = vpop.f32.mrf.mxu0 }
  0xa4   :  { %1340 = vpow2.f32 %v1229_v60  ;;  %v114_v61 = vperm.slane %v1618_v7, 3 }
  0xa5   :  { %v166_v57 = vadd.f32 %v1661_v29, %v157_v52  ;;  %v193_v58 = vadd.f32 %v1663_v30, %v184_v53  ;;  %v219_v59 = vadd.f32 %v1665_v31, %v210_v54  ;;  %v308_v63 = vpop.f32.mrf.mxu3  ;;  %v107_v54 = vperm.slane %v1618_v7, 2 }
  0xa6   :  { %v355_v24 = vadd.f32 %v308_v63, %v1694_v12  ;;  %v407_v56 = vld [vmem:[#allocation2 + $0x8] sm:$0xff] }
  0xa7   :  { %175 = vst.msk [vmem:[#allocation2 + $0x30] sm:$0xff] %vm168_vm0, %v166_v57  ;;  %v297_v62 = vpop.f32.mrf.mxu1  ;;  %v429_v50 = vld [vmem:[#allocation3 + $0x8] sm:$0xff]  ;;  %112 = vperm.xlu1 %1334, %v107_v54  }
  0xa8   :  { %201 = vst.msk [vmem:[#allocation3 + $0x30] sm:$0xff] %vm168_vm0, %v193_v58 }
  0xa9   :  { %227 = vst.msk [vmem:[#allocation4 + $0x30] sm:$0xff] %vm168_vm0, %v219_v59  ;;  %v1339_v0 = vpop.eup %1338 }
  0xaa   :  { %v1341_v1 = vpop.eup %1340  ;;  %v317_v2 = vadd.f32 1.0, %v1339_v0 }
  0xab   :  { %v338_v3 = vadd.f32 1.0, %v1341_v1 }
  0xac   :  { %1342 = vrcp.f32 %v317_v2  ;;  %v329_v16 = vand.u32 2147483648, %v317_v2  ;;  %v327_v20 = vand.u32 2147483647, %v317_v2  ;;  %vm323_vm2 = vweird.f32 %v317_v2 }
  0xad   :  { %1344 = vrcp.f32 %v338_v3  ;;  %v310_v4 = vpop.f32.mrf.mxu3  ;;  %v350_v25 = vand.u32 2147483648, %v338_v3  ;;  %vm344_vm6 = vweird.f32 %v338_v3  ;;  %v348_v38 = vand.u32 2147483647, %v338_v3 }
  0xae   :  { %v330_v32 = vor.u32 1.1754944e-38, %v329_v16  ;;  %vm328_vm4 = vcmp.eq.f32.partialorder %v327_v20, 8.507059e+37  ;;  %v142_v4 = vperm.slane %v1618_v7, 7 }
  0xaf   :  { %v351_v41 = vor.u32 1.1754944e-38, %v350_v25  ;;  %vm349_vm8 = vcmp.eq.f32.partialorder %v348_v38, 8.507059e+37  ;;  %119 = vperm.xlu1 %1334, %v114_v61  }
  0xb2   :  { %v1343_v6 = vpop.eup %1342 }
  0xb3   :  { %v1345_v8 = vpop.eup %1344  ;;  %v319_v10 = vmul.f32 %v1343_v6, %v317_v2  ;;  %vm324_vm1 = vweird.f32 %v1343_v6 }
  0xb4   :  { %v340_v11 = vmul.f32 %v1345_v8, %v338_v3  ;;  %vm325_vm3 = vmor %vm323_vm2, %vm324_vm1  ;;  %vm345_vm5 = vweird.f32 %v1345_v8 }
  0xb5   :  { %v320_v14 = vsub.f32 1.0, %v319_v10  ;;  %vm346_vm7 = vmor %vm344_vm6, %vm345_vm5 }
  0xb6   :  { %v341_v15 = vsub.f32 1.0, %v340_v11 }
  0xb7   :  { %v321_v19 = vmul.f32 %v1343_v6, %v320_v14  ;;  %147 = vperm.xlu1 %1334, %v142_v4  }
  0xb8   :  { %v342_v22 = vmul.f32 %v1345_v8, %v341_v15 }
  0xb9   :  { %v322_v23 = vadd.f32 %v1343_v6, %v321_v19 }
  0xba   :  { %v343_v35 = vadd.f32 %v1345_v8, %v342_v22 }
  0xbb   :  { %v326_v33 = vsel %vm325_vm3, %v1343_v6, %v322_v23 }
  0xbc   :  { %v331_v34 = vsel %vm328_vm4, %v330_v32, %v326_v33  ;;  %v347_v40 = vsel %vm346_vm7, %v1345_v8, %v343_v35 }
  0xbd   :  { %v356_v36 = vmul.f32 %v355_v24, %v331_v34  ;;  %v352_v42 = vsel %vm349_vm8, %v351_v41, %v347_v40 }
  0xbe   :  { %v359_v43 = vsub.f32 1.0, %v352_v42  ;;  %v361_v46 = vmul.f32 0.0, %v352_v42 }
  0xbf   :  { %v357_v39 = vadd.f32 %v356_v36, %v354_v37  ;;  %v451_v37 = vld [vmem:[#allocation4 + $0x8] sm:$0xff] }
  0xc1   :  { %1346 = vtanh.f32 %v357_v39 }
  0xc7   :  { %v1347_v44 = vpop.eup %1346 }
  0xc8   :  { %v360_v45 = vmul.f32 %v1347_v44, %v359_v43 }
  0xca   :  { %v1697_v47 = vadd.f32 %v361_v46, %v360_v45 }
  0xcc   :  { %v363_v48 = vpack.c.bf16 %v1697_v47, %v1697_v47 }
  0xce   :  { %1230 = vmatmul.msk.bf16.vlgmr.msrb.gmra.mxu3 %vm168_vm0, %v363_v48  ;;  %1231 = vmatmul.msk.bf16.vlgmr.msrb.gmra.mxu0 %vm168_vm0, %v363_v48 }
  0xcf   :  { %1232 = vmatmul.msk.bf16.vlgmr.msrb.gmra.mxu1 %vm168_vm0, %v363_v48  ;;  %593 = vmatpush.bf16.msrb.mxu3 %v1630_v18 }
  0xd0   :  { %664 = vmatpush.bf16.msrb.mxu0 %v1613_v5  ;;  %677 = vmatpush.bf16.msrb.mxu1 %v1620_v9 }
  0xd3   :  { %594 = vmatpush.bf16.msrb.mxu3 %v1633_v21 }
  0xd4   :  { %665 = vmatpush.bf16.msrb.mxu0 %v1624_v13  ;;  %678 = vmatpush.bf16.msrb.mxu1 %v1628_v17 }
 0x14b   :  { %v389_v49 = vpop.f32.mrf.mxu0 }
 0x14c   :  { %v430_v51 = vadd.f32 %v429_v50, %v389_v49  ;;  %v402_v52 = vpop.f32.mrf.mxu1 }
 0x14d   :  { %v452_v24 = vadd.f32 %v402_v52, %v1694_v12 }
 0x14e   :  { %v1234_v53 = vmul.f32 -1.442695, %v430_v51 }
 0x150   :  { %1348 = vpow2.f32 %v1234_v53 }
 0x151   :  { %v376_v55 = vpop.f32.mrf.mxu3 }
 0x152   :  { %v408_v57 = vadd.f32 %v407_v56, %v376_v55 }
 0x153   :  { %v391_v58 = vpop.f32.mrf.mxu0 }
 0x154   :  { %v1233_v59 = vmul.f32 -1.442695, %v408_v57  ;;  %v404_v60 = vpop.f32.mrf.mxu1 }
 0x156   :  { %v1349_v62 = vpop.eup %1348  ;;  %1350 = vpow2.f32 %v1233_v59 }
 0x157   :  { %v434_v63 = vadd.f32 1.0, %v1349_v62 }
 0x159   :  { %v378_v0 = vpop.f32.mrf.mxu3  ;;  %1352 = vrcp.f32 %v434_v63  ;;  %v446_v35 = vand.u32 2147483648, %v434_v63  ;;  %vm440_vm14 = vweird.f32 %v434_v63  ;;  %v444_v36 = vand.u32 2147483647, %v434_v63 }
 0x15b   :  { %v447_v40 = vor.u32 1.1754944e-38, %v446_v35  ;;  %vm445_vm1 = vcmp.eq.f32.partialorder %v444_v36, 8.507059e+37 }
 0x15c   :  { %v1351_v1 = vpop.eup %1350 }
 0x15d   :  { %v412_v2 = vadd.f32 1.0, %v1351_v1 }
 0x15f   :  { %1354 = vrcp.f32 %v412_v2  ;;  %v1353_v3 = vpop.eup %1352  ;;  %v424_v15 = vand.u32 2147483648, %v412_v2  ;;  %v422_v19 = vand.u32 2147483647, %v412_v2  ;;  %vm418_vm10 = vweird.f32 %v412_v2 }
 0x160   :  { %v436_v6 = vmul.f32 %v1353_v3, %v434_v63  ;;  %vm441_vm13 = vweird.f32 %v1353_v3 }
 0x161   :  { %v425_v23 = vor.u32 1.1754944e-38, %v424_v15  ;;  %vm423_vm12 = vcmp.eq.f32.partialorder %v422_v19, 8.507059e+37  ;;  %vm442_vm15 = vmor %vm440_vm14, %vm441_vm13 }
 0x162   :  { %v437_v11 = vsub.f32 1.0, %v436_v6 }
 0x164   :  { %v438_v20 = vmul.f32 %v1353_v3, %v437_v11 }
 0x165   :  { %v1355_v8 = vpop.eup %1354 }
 0x166   :  { %v414_v10 = vmul.f32 %v1355_v8, %v412_v2  ;;  %vm419_vm9 = vweird.f32 %v1355_v8  ;;  %v439_v34 = vadd.f32 %v1353_v3, %v438_v20 }
 0x167   :  { %vm420_vm11 = vmor %vm418_vm10, %vm419_vm9 }
 0x168   :  { %v415_v14 = vsub.f32 1.0, %v414_v10  ;;  %v443_v39 = vsel %vm442_vm15, %v1353_v3, %v439_v34 }
 0x169   :  { %v448_v41 = vsel %vm445_vm1, %v447_v40, %v443_v39 }
 0x16a   :  { %v416_v16 = vmul.f32 %v1355_v8, %v415_v14  ;;  %v456_v42 = vsub.f32 1.0, %v448_v41  ;;  %v458_v45 = vmul.f32 %v448_v41, %v1697_v47  ;;  %v113_v47 = vpop.permute.xlu1 %112 }
 0x16b   :  { %v153_v49 = vmul.f32 %v1655_v26, %v113_v47  ;;  %v180_v50 = vmul.f32 %v1657_v27, %v113_v47  ;;  %v206_v51 = vmul.f32 %v1659_v28, %v113_v47 }
 0x16c   :  { %v417_v22 = vadd.f32 %v1355_v8, %v416_v16 }
 0x16d   :  { %v162_v52 = vadd.f32 %v1661_v29, %v153_v49  ;;  %v189_v53 = vadd.f32 %v1663_v30, %v180_v50  ;;  %v215_v54 = vadd.f32 %v1665_v31, %v206_v51 }
 0x16e   :  { %v421_v32 = vsel %vm420_vm11, %v1355_v8, %v417_v22 }
 0x16f   :  { %v426_v33 = vsel %vm423_vm12, %v425_v23, %v421_v32  ;;  %171 = vst.msk [vmem:[#allocation2 + $0x10] sm:$0xff] %vm168_vm0, %v162_v52 }
 0x170   :  { %v453_v25 = vmul.f32 %v452_v24, %v426_v33  ;;  %197 = vst.msk [vmem:[#allocation3 + $0x10] sm:$0xff] %vm168_vm0, %v189_v53 }
 0x171   :  { %223 = vst.msk [vmem:[#allocation4 + $0x10] sm:$0xff] %vm168_vm0, %v215_v54 }
 0x172   :  { %v454_v38 = vadd.f32 %v453_v25, %v451_v37  ;;  %v120_v55 = vpop.permute.xlu1 %119 }
 0x173   :  { %v154_v56 = vmul.f32 %v1655_v26, %v120_v55  ;;  %v181_v57 = vmul.f32 %v1657_v27, %v120_v55  ;;  %v207_v58 = vmul.f32 %v1659_v28, %v120_v55 }
 0x174   :  { %1356 = vtanh.f32 %v454_v38 }
 0x175   :  { %v163_v59 = vadd.f32 %v1661_v29, %v154_v56  ;;  %v190_v60 = vadd.f32 %v1663_v30, %v181_v57  ;;  %v216_v61 = vadd.f32 %v1665_v31, %v207_v58 }
 0x176   :  { %v504_v8 = vld [vmem:[#allocation2 + $0x10] sm:$0xff] }
 0x177   :  { %172 = vst.msk [vmem:[#allocation2 + $0x18] sm:$0xff] %vm168_vm0, %v163_v59  ;;  %v526_v10 = vld [vmem:[#allocation3 + $0x10] sm:$0xff] }
 0x178   :  { %198 = vst.msk [vmem:[#allocation3 + $0x18] sm:$0xff] %vm168_vm0, %v190_v60  ;;  %v548_v54 = vld [vmem:[#allocation4 + $0x10] sm:$0xff] }
 0x179   :  { %224 = vst.msk [vmem:[#allocation4 + $0x18] sm:$0xff] %vm168_vm0, %v216_v61 }
 0x17a   :  { %v1357_v43 = vpop.eup %1356  ;;  %v148_v62 = vpop.permute.xlu1 %147 }
 0x17b   :  { %v457_v44 = vmul.f32 %v1357_v43, %v456_v42  ;;  %v158_v63 = vmul.f32 %v1655_v26, %v148_v62  ;;  %v185_v0 = vmul.f32 %v1657_v27, %v148_v62  ;;  %v211_v1 = vmul.f32 %v1659_v28, %v148_v62 }
 0x17d   :  { %v1715_v46 = vadd.f32 %v458_v45, %v457_v44  ;;  %v167_v2 = vadd.f32 %v1661_v29, %v158_v63  ;;  %v194_v3 = vadd.f32 %v1663_v30, %v185_v0  ;;  %v220_v4 = vadd.f32 %v1665_v31, %v211_v1 }
 0x17f   :  { %v460_v48 = vpack.c.bf16 %v1715_v46, %v1715_v46  ;;  %176 = vst.msk [vmem:[#allocation2 + $0x38] sm:$0xff] %vm168_vm0, %v167_v2  ;;  %v601_v2 = vld [vmem:[#allocation2 + $0x18] sm:$0xff] }
 0x180   :  { %202 = vst.msk [vmem:[#allocation3 + $0x38] sm:$0xff] %vm168_vm0, %v194_v3 }
 0x181   :  { %1235 = vmatmul.msk.bf16.vlgmr.msra.gmra.mxu2 %vm168_vm0, %v460_v48  ;;  %1236 = vmatmul.msk.bf16.vlgmr.msra.gmra.mxu3 %vm168_vm0, %v460_v48  ;;  %228 = vst.msk [vmem:[#allocation4 + $0x38] sm:$0xff] %vm168_vm0, %v220_v4 }
 0x182   :  { %1237 = vmatmul.msk.bf16.vlgmr.msra.gmra.mxu0 %vm168_vm0, %v460_v48  ;;  %690 = vmatpush.bf16.msra.mxu2 %v1630_v18 }
 0x183   :  { %761 = vmatpush.bf16.msra.mxu3 %v1613_v5  ;;  %774 = vmatpush.bf16.msra.mxu0 %v1620_v9 }
 0x186   :  { %691 = vmatpush.bf16.msra.mxu2 %v1633_v21 }
 0x187   :  { %762 = vmatpush.bf16.msra.mxu3 %v1624_v13  ;;  %775 = vmatpush.bf16.msra.mxu0 %v1628_v17 }
 0x1ff   :  { %v499_v6 = vpop.f32.mrf.mxu0 }
 0x200   :  { %v549_v47 = vadd.f32 %v499_v6, %v1694_v12 }
 0x204   :  { %v473_v11 = vpop.f32.mrf.mxu2  ;;  %v486_v14 = vpop.f32.mrf.mxu3 }
 0x205   :  { %v505_v15 = vadd.f32 %v504_v8, %v473_v11  ;;  %v527_v16 = vadd.f32 %v526_v10, %v486_v14  ;;  %v623_v8 = vld [vmem:[#allocation3 + $0x18] sm:$0xff] }
 0x207   :  { %v1238_v19 = vmul.f32 -1.442695, %v505_v15  ;;  %v1239_v20 = vmul.f32 -1.442695, %v527_v16  ;;  %v501_v22 = vpop.f32.mrf.mxu0 }
 0x209   :  { %1358 = vpow2.f32 %v1238_v19 }
 0x20a   :  { %1360 = vpow2.f32 %v1239_v20 }
 0x20c   :  { %v475_v23 = vpop.f32.mrf.mxu2  ;;  %v488_v24 = vpop.f32.mrf.mxu3 }
 0x20d   :  { %v121_v24 = vperm.slane %v1618_v7, 4 }
 0x20f   :  { %v1359_v32 = vpop.eup %1358  ;;  %126 = vperm.xlu2 %1335, %v121_v24  }
 0x210   :  { %v1361_v33 = vpop.eup %1360  ;;  %v509_v34 = vadd.f32 1.0, %v1359_v32 }
 0x211   :  { %v531_v35 = vadd.f32 1.0, %v1361_v33 }
 0x212   :  { %1362 = vrcp.f32 %v509_v34  ;;  %v521_v40 = vand.u32 2147483648, %v509_v34  ;;  %v519_v43 = vand.u32 2147483647, %v509_v34  ;;  %vm515_vm3 = vweird.f32 %v509_v34 }
 0x213   :  { %1364 = vrcp.f32 %v531_v35  ;;  %v543_v53 = vand.u32 2147483648, %v531_v35  ;;  %vm537_vm7 = vweird.f32 %v531_v35  ;;  %v541_v55 = vand.u32 2147483647, %v531_v35 }
 0x214   :  { %v522_v48 = vor.u32 1.1754944e-38, %v521_v40  ;;  %vm520_vm5 = vcmp.eq.f32.partialorder %v519_v43, 8.507059e+37 }
 0x215   :  { %v544_v58 = vor.u32 1.1754944e-38, %v543_v53  ;;  %vm542_vm9 = vcmp.eq.f32.partialorder %v541_v55, 8.507059e+37 }
 0x218   :  { %v1363_v25 = vpop.eup %1362 }
 0x219   :  { %v1365_v36 = vpop.eup %1364  ;;  %v511_v37 = vmul.f32 %v1363_v25, %v509_v34  ;;  %vm516_vm2 = vweird.f32 %v1363_v25 }
 0x21a   :  { %v533_v38 = vmul.f32 %v1365_v36, %v531_v35  ;;  %vm517_vm4 = vmor %vm515_vm3, %vm516_vm2  ;;  %vm538_vm6 = vweird.f32 %v1365_v36 }
 0x21b   :  { %v512_v39 = vsub.f32 1.0, %v511_v37  ;;  %vm539_vm8 = vmor %vm537_vm7, %vm538_vm6 }
 0x21c   :  { %v534_v41 = vsub.f32 1.0, %v533_v38 }
 0x21d   :  { %v513_v42 = vmul.f32 %v1363_v25, %v512_v39 }
 0x21e   :  { %v535_v44 = vmul.f32 %v1365_v36, %v534_v41 }
 0x21f   :  { %v514_v45 = vadd.f32 %v1363_v25, %v513_v42 }
 0x220   :  { %v536_v51 = vadd.f32 %v1365_v36, %v535_v44 }
 0x221   :  { %v518_v49 = vsel %vm517_vm4, %v1363_v25, %v514_v45  ;;  %v128_v25 = vperm.slane %v1618_v7, 5 }
 0x222   :  { %v523_v50 = vsel %vm520_vm5, %v522_v48, %v518_v49  ;;  %v540_v57 = vsel %vm539_vm8, %v1365_v36, %v536_v51  ;;  %v645_v51 = vld [vmem:[#allocation4 + $0x18] sm:$0xff] }
 0x223   :  { %v550_v52 = vmul.f32 %v549_v47, %v523_v50  ;;  %v545_v59 = vsel %vm542_vm9, %v544_v58, %v540_v57  ;;  %133 = vperm.xlu2 %1335, %v128_v25  }
 0x224   :  { %v553_v60 = vsub.f32 1.0, %v545_v59  ;;  %v555_v63 = vmul.f32 %v545_v59, %v1715_v46 }
 0x225   :  { %v551_v56 = vadd.f32 %v550_v52, %v548_v54 }
 0x227   :  { %1366 = vtanh.f32 %v551_v56 }
 0x22d   :  { %v1367_v61 = vpop.eup %1366 }
 0x22e   :  { %v554_v62 = vmul.f32 %v1367_v61, %v553_v60 }
 0x230   :  { %v1757_v0 = vadd.f32 %v555_v63, %v554_v62 }
 0x232   :  { %v557_v1 = vpack.c.bf16 %v1757_v0, %v1757_v0 }
 0x234   :  { %1240 = vmatmul.msk.bf16.vlgmr.msra.gmra.mxu1 %vm168_vm0, %v557_v1  ;;  %1241 = vmatmul.msk.bf16.vlgmr.msrb.gmra.mxu2 %vm168_vm0, %v557_v1 }
 0x235   :  { %1242 = vmatmul.msk.bf16.vlgmr.msrb.gmra.mxu3 %vm168_vm0, %v557_v1  ;;  %787 = vmatpush.bf16.msra.mxu1 %v1630_v18 }
 0x236   :  { %858 = vmatpush.bf16.msrb.mxu2 %v1613_v5  ;;  %871 = vmatpush.bf16.msrb.mxu3 %v1620_v9 }
 0x239   :  { %788 = vmatpush.bf16.msra.mxu1 %v1633_v21 }
 0x23a   :  { %859 = vmatpush.bf16.msrb.mxu2 %v1624_v13  ;;  %872 = vmatpush.bf16.msrb.mxu3 %v1628_v17 }
 0x269   :  { %v127_v63 = vpop.permute.xlu2 %126 }
 0x26a   :  { %v182_v1 = vmul.f32 %v1657_v27, %v127_v63 }
 0x2b1   :  { %v570_v46 = vpop.f32.mrf.mxu1 }
 0x2b2   :  { %v602_v3 = vadd.f32 %v601_v2, %v570_v46  ;;  %v208_v46 = vmul.f32 %v1659_v28, %v127_v63 }
 0x2b4   :  { %v1243_v4 = vmul.f32 -1.442695, %v602_v3  ;;  %v191_v3 = vadd.f32 %v1663_v30, %v182_v1 }
 0x2b6   :  { %1368 = vpow2.f32 %v1243_v4  ;;  %199 = vst.msk [vmem:[#allocation3 + $0x20] sm:$0xff] %vm168_vm0, %v191_v3 }
 0x2b7   :  { %v583_v6 = vpop.f32.mrf.mxu2 }
 0x2b8   :  { %v624_v10 = vadd.f32 %v623_v8, %v583_v6  ;;  %v596_v11 = vpop.f32.mrf.mxu3 }
 0x2b9   :  { %v572_v14 = vpop.f32.mrf.mxu1  ;;  %v646_v45 = vadd.f32 %v596_v11, %v1694_v12 }
 0x2ba   :  { %v1244_v15 = vmul.f32 -1.442695, %v624_v10 }
 0x2bc   :  { %v1369_v16 = vpop.eup %1368  ;;  %1370 = vpow2.f32 %v1244_v15 }
 0x2bd   :  { %v606_v19 = vadd.f32 1.0, %v1369_v16  ;;  %v720_v14 = vld [vmem:[#allocation3 + $0x20] sm:$0xff] }
 0x2bf   :  { %1372 = vrcp.f32 %v606_v19  ;;  %v585_v20 = vpop.f32.mrf.mxu2  ;;  %v618_v36 = vand.u32 2147483648, %v606_v19  ;;  %v616_v38 = vand.u32 2147483647, %v606_v19  ;;  %vm612_vm11 = vweird.f32 %v606_v19 }
 0x2c0   :  { %v598_v22 = vpop.f32.mrf.mxu3 }
 0x2c1   :  { %v619_v42 = vor.u32 1.1754944e-38, %v618_v36  ;;  %vm617_vm13 = vcmp.eq.f32.partialorder %v616_v38, 8.507059e+37 }
 0x2c2   :  { %v1371_v23 = vpop.eup %1370 }
 0x2c3   :  { %v628_v32 = vadd.f32 1.0, %v1371_v23 }
 0x2c5   :  { %v1373_v33 = vpop.eup %1372  ;;  %1374 = vrcp.f32 %v628_v32  ;;  %v640_v7 = vand.u32 2147483648, %v628_v32  ;;  %v638_v50 = vand.u32 2147483647, %v628_v32  ;;  %vm634_vm15 = vweird.f32 %v628_v32 }
 0x2c6   :  { %v608_v34 = vmul.f32 %v1373_v33, %v606_v19  ;;  %vm613_vm10 = vweird.f32 %v1373_v33 }
 0x2c7   :  { %vm614_vm12 = vmor %vm612_vm11, %vm613_vm10  ;;  %v641_v54 = vor.u32 1.1754944e-38, %v640_v7  ;;  %vm639_vm2 = vcmp.eq.f32.partialorder %v638_v50, 8.507059e+37 }
 0x2c8   :  { %v609_v35 = vsub.f32 1.0, %v608_v34 }
 0x2ca   :  { %v610_v37 = vmul.f32 %v1373_v33, %v609_v35 }
 0x2cb   :  { %v1375_v39 = vpop.eup %1374 }
 0x2cc   :  { %v630_v40 = vmul.f32 %v1375_v39, %v628_v32  ;;  %v611_v41 = vadd.f32 %v1373_v33, %v610_v37  ;;  %vm635_vm14 = vweird.f32 %v1375_v39 }
 0x2cd   :  { %vm636_vm1 = vmor %vm634_vm15, %vm635_vm14 }
 0x2ce   :  { %v631_v43 = vsub.f32 1.0, %v630_v40  ;;  %v615_v44 = vsel %vm614_vm12, %v1373_v33, %v611_v41 }
 0x2cf   :  { %v620_v48 = vsel %vm617_vm13, %v619_v42, %v615_v44 }
 0x2d0   :  { %v632_v47 = vmul.f32 %v1375_v39, %v631_v43  ;;  %v647_v49 = vmul.f32 %v646_v45, %v620_v48 }
 0x2d2   :  { %v633_v52 = vadd.f32 %v1375_v39, %v632_v47  ;;  %v648_v53 = vadd.f32 %v647_v49, %v645_v51 }
 0x2d4   :  { %v637_v55 = vsel %vm636_vm1, %v1375_v39, %v633_v52  ;;  %1376 = vtanh.f32 %v648_v53 }
 0x2d5   :  { %v642_v56 = vsel %vm639_vm2, %v641_v54, %v637_v55 }
 0x2d6   :  { %v650_v57 = vsub.f32 1.0, %v642_v56  ;;  %v652_v60 = vmul.f32 %v642_v56, %v1757_v0  ;;  %v155_v0 = vmul.f32 %v1655_v26, %v127_v63 }
 0x2d8   :  { %v164_v2 = vadd.f32 %v1661_v29, %v155_v0 }
 0x2da   :  { %v1377_v58 = vpop.eup %1376  ;;  %173 = vst.msk [vmem:[#allocation2 + $0x20] sm:$0xff] %vm168_vm0, %v164_v2 }
 0x2db   :  { %v651_v59 = vmul.f32 %v1377_v58, %v650_v57 }
 0x2dd   :  { %v1774_v61 = vadd.f32 %v652_v60, %v651_v59 }
 0x2df   :  { %v654_v62 = vpack.c.bf16 %v1774_v61, %v1774_v61 }
 0x2e1   :  { %1245 = vmatmul.msk.bf16.vlgmr.msrb.gmra.mxu0 %vm168_vm0, %v654_v62  ;;  %1246 = vmatmul.msk.bf16.vlgmr.msrb.gmra.mxu1 %vm168_vm0, %v654_v62  ;;  %v698_v11 = vld [vmem:[#allocation2 + $0x20] sm:$0xff] }
 0x2e2   :  { %1247 = vmatmul.msk.bf16.vlgmr.msra.gmra.mxu2 %vm168_vm0, %v654_v62  ;;  %884 = vmatpush.bf16.msrb.mxu0 %v1630_v18 }
 0x2e3   :  { %955 = vmatpush.bf16.msrb.mxu1 %v1613_v5  ;;  %968 = vmatpush.bf16.msra.mxu2 %v1620_v9  ;;  %v217_v5 = vadd.f32 %v1665_v31, %v208_v46  ;;  %v134_v9 = vpop.permute.xlu2 %133 }
 0x2e4   :  { %v209_v4 = vmul.f32 %v1659_v28, %v134_v9 }
 0x2e5   :  { %225 = vst.msk [vmem:[#allocation4 + $0x20] sm:$0xff] %vm168_vm0, %v217_v5 }
 0x2e6   :  { %885 = vmatpush.bf16.msrb.mxu0 %v1633_v21  ;;  %v218_v10 = vadd.f32 %v1665_v31, %v209_v4 }
 0x2e7   :  { %956 = vmatpush.bf16.msrb.mxu1 %v1624_v13  ;;  %969 = vmatpush.bf16.msra.mxu2 %v1628_v17  ;;  %v156_v13 = vmul.f32 %v1655_v26, %v134_v9  ;;  %v183_v17 = vmul.f32 %v1657_v27, %v134_v9 }
 0x2e8   :  { %226 = vst.msk [vmem:[#allocation4 + $0x28] sm:$0xff] %vm168_vm0, %v218_v10 }
 0x2e9   :  { %v165_v6 = vadd.f32 %v1661_v29, %v156_v13  ;;  %v192_v8 = vadd.f32 %v1663_v30, %v183_v17 }
 0x2eb   :  { %174 = vst.msk [vmem:[#allocation2 + $0x28] sm:$0xff] %vm168_vm0, %v165_v6 }
 0x2ec   :  { %200 = vst.msk [vmem:[#allocation3 + $0x28] sm:$0xff] %vm168_vm0, %v192_v8  ;;  %v742_v51 = vld [vmem:[#allocation4 + $0x20] sm:$0xff] }
 0x2f2   :  { %v795_v3 = vld [vmem:[#allocation2 + $0x28] sm:$0xff] }
 0x2f3   :  { %v817_v0 = vld [vmem:[#allocation3 + $0x28] sm:$0xff] }
 0x35e   :  { %v667_v15 = vpop.f32.mrf.mxu0  ;;  %v680_v26 = vpop.f32.mrf.mxu1 }
 0x35f   :  { %v699_v16 = vadd.f32 %v698_v11, %v667_v15  ;;  %v721_v27 = vadd.f32 %v720_v14, %v680_v26 }
 0x361   :  { %v1248_v19 = vmul.f32 -1.442695, %v699_v16  ;;  %v1249_v28 = vmul.f32 -1.442695, %v721_v27 }
 0x363   :  { %1378 = vpow2.f32 %v1248_v19 }
 0x364   :  { %1380 = vpow2.f32 %v1249_v28 }
 0x365   :  { %v693_v29 = vpop.f32.mrf.mxu2 }
 0x366   :  { %v669_v30 = vpop.f32.mrf.mxu0  ;;  %v682_v20 = vpop.f32.mrf.mxu1  ;;  %v743_v45 = vadd.f32 %v693_v29, %v1694_v12 }
 0x369   :  { %v1379_v31 = vpop.eup %1378 }
 0x36a   :  { %v1381_v22 = vpop.eup %1380  ;;  %v703_v23 = vadd.f32 1.0, %v1379_v31 }
 0x36b   :  { %v725_v24 = vadd.f32 1.0, %v1381_v22 }
 0x36c   :  { %1382 = vrcp.f32 %v703_v23  ;;  %v715_v38 = vand.u32 2147483648, %v703_v23  ;;  %v713_v40 = vand.u32 2147483647, %v703_v23  ;;  %vm709_vm4 = vweird.f32 %v703_v23 }
 0x36d   :  { %1384 = vrcp.f32 %v725_v24  ;;  %v695_v32 = vpop.f32.mrf.mxu2  ;;  %v737_v7 = vand.u32 2147483648, %v725_v24  ;;  %vm731_vm8 = vweird.f32 %v725_v24  ;;  %v735_v50 = vand.u32 2147483647, %v725_v24 }
 0x36e   :  { %v716_v43 = vor.u32 1.1754944e-38, %v715_v38  ;;  %vm714_vm6 = vcmp.eq.f32.partialorder %v713_v40, 8.507059e+37 }
 0x36f   :  { %v738_v54 = vor.u32 1.1754944e-38, %v737_v7  ;;  %vm736_vm10 = vcmp.eq.f32.partialorder %v735_v50, 8.507059e+37 }
 0x372   :  { %v1383_v33 = vpop.eup %1382 }
 0x373   :  { %v1385_v34 = vpop.eup %1384  ;;  %v705_v35 = vmul.f32 %v1383_v33, %v703_v23  ;;  %vm710_vm3 = vweird.f32 %v1383_v33 }
 0x374   :  { %v727_v25 = vmul.f32 %v1385_v34, %v725_v24  ;;  %vm711_vm5 = vmor %vm709_vm4, %vm710_vm3  ;;  %vm732_vm7 = vweird.f32 %v1385_v34 }
 0x375   :  { %v706_v36 = vsub.f32 1.0, %v705_v35  ;;  %vm733_vm9 = vmor %vm731_vm8, %vm732_vm7  ;;  %v839_v35 = vld [vmem:[#allocation4 + $0x28] sm:$0xff] }
 0x376   :  { %v728_v37 = vsub.f32 1.0, %v727_v25 }
 0x377   :  { %v707_v39 = vmul.f32 %v1383_v33, %v706_v36 }
 0x378   :  { %v729_v41 = vmul.f32 %v1385_v34, %v728_v37 }
 0x379   :  { %v708_v42 = vadd.f32 %v1383_v33, %v707_v39 }
 0x37a   :  { %v730_v48 = vadd.f32 %v1385_v34, %v729_v41 }
 0x37b   :  { %v712_v44 = vsel %vm711_vm5, %v1383_v33, %v708_v42 }
 0x37c   :  { %v717_v47 = vsel %vm714_vm6, %v716_v43, %v712_v44  ;;  %v734_v53 = vsel %vm733_vm9, %v1385_v34, %v730_v48 }
 0x37d   :  { %v744_v49 = vmul.f32 %v743_v45, %v717_v47  ;;  %v739_v55 = vsel %vm736_vm10, %v738_v54, %v734_v53  ;;  %v892_v47 = vld [vmem:[#allocation2 + $0x30] sm:$0xff] }
 0x37e   :  { %v747_v56 = vsub.f32 1.0, %v739_v55  ;;  %v749_v59 = vmul.f32 %v739_v55, %v1774_v61 }
 0x37f   :  { %v745_v52 = vadd.f32 %v744_v49, %v742_v51  ;;  %v914_v49 = vld [vmem:[#allocation3 + $0x30] sm:$0xff] }
 0x381   :  { %1386 = vtanh.f32 %v745_v52 }
 0x387   :  { %v1387_v57 = vpop.eup %1386 }
 0x388   :  { %v748_v58 = vmul.f32 %v1387_v57, %v747_v56 }
 0x38a   :  { %v1807_v60 = vadd.f32 %v749_v59, %v748_v58 }
 0x38c   :  { %v751_v62 = vpack.c.bf16 %v1807_v60, %v1807_v60 }
 0x38e   :  { %1250 = vmatmul.msk.bf16.vlgmr.msra.gmra.mxu3 %vm168_vm0, %v751_v62  ;;  %1251 = vmatmul.msk.bf16.vlgmr.msra.gmra.mxu0 %vm168_vm0, %v751_v62 }
 0x38f   :  { %1252 = vmatmul.msk.bf16.vlgmr.msra.gmra.mxu1 %vm168_vm0, %v751_v62  ;;  %981 = vmatpush.bf16.msra.mxu3 %v1630_v18 }
 0x393   :  { %982 = vmatpush.bf16.msra.mxu3 %v1633_v21 }
 0x40b   :  { %v777_v63 = vpop.f32.mrf.mxu0 }
 0x40c   :  { %v818_v1 = vadd.f32 %v817_v0, %v777_v63  ;;  %v790_v46 = vpop.f32.mrf.mxu1 }
 0x40d   :  { %v840_v31 = vadd.f32 %v790_v46, %v1694_v12 }
 0x40e   :  { %v1254_v61 = vmul.f32 -1.442695, %v818_v1 }
 0x410   :  { %1388 = vpow2.f32 %v1254_v61 }
 0x411   :  { %v764_v2 = vpop.f32.mrf.mxu3 }
 0x412   :  { %v796_v5 = vadd.f32 %v795_v3, %v764_v2 }
 0x413   :  { %v779_v9 = vpop.f32.mrf.mxu0 }
 0x414   :  { %v1253_v13 = vmul.f32 -1.442695, %v796_v5  ;;  %v792_v17 = vpop.f32.mrf.mxu1 }
 0x416   :  { %v1389_v4 = vpop.eup %1388  ;;  %1390 = vpow2.f32 %v1253_v13 }
 0x417   :  { %v822_v6 = vadd.f32 1.0, %v1389_v4 }
 0x419   :  { %v766_v8 = vpop.f32.mrf.mxu3  ;;  %1392 = vrcp.f32 %v822_v6  ;;  %v834_v32 = vand.u32 2147483648, %v822_v6  ;;  %vm828_vm1 = vweird.f32 %v822_v6  ;;  %v832_v34 = vand.u32 2147483647, %v822_v6 }
 0x41b   :  { %v835_v37 = vor.u32 1.1754944e-38, %v834_v32  ;;  %vm833_vm3 = vcmp.eq.f32.partialorder %v832_v34, 8.507059e+37 }
 0x41c   :  { %v1391_v18 = vpop.eup %1390 }
 0x41d   :  { %v800_v10 = vadd.f32 1.0, %v1391_v18 }
 0x41f   :  { %1394 = vrcp.f32 %v800_v10  ;;  %v1393_v21 = vpop.eup %1392  ;;  %v812_v27 = vand.u32 2147483648, %v800_v10  ;;  %v810_v28 = vand.u32 2147483647, %v800_v10  ;;  %vm806_vm12 = vweird.f32 %v800_v10 }
 0x420   :  { %v824_v11 = vmul.f32 %v1393_v21, %v822_v6  ;;  %vm829_vm15 = vweird.f32 %v1393_v21 }
 0x421   :  { %v813_v20 = vor.u32 1.1754944e-38, %v812_v27  ;;  %vm811_vm14 = vcmp.eq.f32.partialorder %v810_v28, 8.507059e+37  ;;  %vm830_vm2 = vmor %vm828_vm1, %vm829_vm15 }
 0x422   :  { %v825_v26 = vsub.f32 1.0, %v824_v11  ;;  %v936_v11 = vld [vmem:[#allocation4 + $0x30] sm:$0xff] }
 0x424   :  { %v826_v29 = vmul.f32 %v1393_v21, %v825_v26 }
 0x425   :  { %v1395_v14 = vpop.eup %1394 }
 0x426   :  { %v802_v15 = vmul.f32 %v1395_v14, %v800_v10  ;;  %vm807_vm11 = vweird.f32 %v1395_v14  ;;  %v827_v23 = vadd.f32 %v1393_v21, %v826_v29 }
 0x427   :  { %vm808_vm13 = vmor %vm806_vm12, %vm807_vm11  ;;  %vm1054_vm12 = vcmask 1041408  }
 0x428   :  { %v803_v16 = vsub.f32 1.0, %v802_v15  ;;  %v831_v36 = vsel %vm830_vm2, %v1393_v21, %v827_v23  ;;  %v989_v23 = vld [vmem:[#allocation2 + $0x38] sm:$0xff] }
 0x429   :  { %v836_v38 = vsel %vm833_vm3, %v835_v37, %v831_v36 }
 0x42a   :  { %v804_v19 = vmul.f32 %v1395_v14, %v803_v16  ;;  %v844_v39 = vsub.f32 1.0, %v836_v38  ;;  %v846_v42 = vmul.f32 %v836_v38, %v1807_v60  ;;  %v1047_v38 = vld [vmem:[%s1848_s1] sm:$0xff] }
 0x42c   :  { %v805_v30 = vadd.f32 %v1395_v14, %v804_v19 }
 0x42e   :  { %v809_v22 = vsel %vm808_vm13, %v1395_v14, %v805_v30  ;;  %vm1050_vm13 = vcmask 31744  }
 0x42f   :  { %v814_v24 = vsel %vm811_vm14, %v813_v20, %v809_v22 }
 0x430   :  { %v841_v33 = vmul.f32 %v840_v31, %v814_v24 }
 0x432   :  { %v842_v25 = vadd.f32 %v841_v33, %v839_v35  ;;  %v1049_v33 = vld [vmem:[%s1852_s5] sm:$0x3]  ;;  %v1011_v35 = vld [vmem:[#allocation3 + $0x38] sm:$0xff] }
 0x434   :  { %1396 = vtanh.f32 %v842_v25  ;;  %v1056_v25 = vsel %vm1054_vm12, %v1049_v33, 0 }
 0x435   :  { %1065 = vmatpush.bf16.msra.mxu0 %v1056_v25 }
 0x43a   :  { %v1397_v40 = vpop.eup %1396 }
 0x43b   :  { %v845_v41 = vmul.f32 %v1397_v40, %v844_v39  ;;  %v1048_v40 = vpack.c.bf16 %v1047_v38, %v1047_v38 }
 0x43d   :  { %v847_v43 = vadd.f32 %v846_v42, %v845_v41  ;;  %v1314_v42 = vld [vmem:[#allocation10 + $0x8] sm:$0xff] }
 0x43e   :  { %1092 = vmatpush.bf16.msra.mxu1 %v1314_v42 }
 0x43f   :  { %v848_v44 = vpack.c.bf16 %v847_v43, %v847_v43 }
 0x441   :  { %1255 = vmatmul.msk.bf16.vlgmr.msrb.gmra.mxu2 %vm168_vm0, %v848_v44  ;;  %1256 = vmatmul.msk.bf16.vlgmr.msrb.gmra.mxu3 %vm168_vm0, %v848_v44 }
 0x442   :  { %1257 = vmatmul.msk.bf16.vlgmr.msrb.gmra.mxu0 %vm168_vm0, %v848_v44  ;;  %v1313_v44 = vld [vmem:[#allocation10] sm:$0xff] }
 0x443   :  { %1093 = vmatpush.bf16.msra.mxu1 %v1313_v44 }
 0x452   :  { %1265 = vmatmul.msk.bf16.vlgmr.msra.gmra.mxu0 %vm1050_vm13, %v1048_v40 }
 0x4bf   :  { %v887_v45 = vpop.f32.mrf.mxu0 }
 0x4c0   :  { %v937_v4 = vadd.f32 %v887_v45, %v1694_v12 }
 0x4c4   :  { %v861_v48 = vpop.f32.mrf.mxu2  ;;  %v874_v7 = vpop.f32.mrf.mxu3 }
 0x4c5   :  { %v893_v50 = vadd.f32 %v892_v47, %v861_v48  ;;  %v915_v51 = vadd.f32 %v914_v49, %v874_v7  ;;  %v1322_v7 = vld [vmem:[#allocation11 + $0x38] sm:$0xff] }
 0x4c6   :  { %1170 = vmatpush.bf16.msrb.mxu2 %v1322_v7 }
 0x4c7   :  { %v1258_v52 = vmul.f32 -1.442695, %v893_v50  ;;  %v1259_v53 = vmul.f32 -1.442695, %v915_v51  ;;  %v889_v54 = vpop.f32.mrf.mxu0  ;;  %v1321_v51 = vld [vmem:[#allocation11 + $0x30] sm:$0xff] }
 0x4c8   :  { %v1320_v54 = vld [vmem:[#allocation11 + $0x28] sm:$0xff] }
 0x4c9   :  { %1398 = vpow2.f32 %v1258_v52 }
 0x4ca   :  { %1400 = vpow2.f32 %v1259_v53  ;;  %1171 = vmatpush.bf16.msrb.mxu2 %v1321_v51 }
 0x4cc   :  { %v863_v55 = vpop.f32.mrf.mxu2  ;;  %v876_v56 = vpop.f32.mrf.mxu3 }
 0x4ce   :  { %1172 = vmatpush.bf16.msrb.mxu2 %v1320_v54 }
 0x4cf   :  { %v1399_v57 = vpop.eup %1398 }
 0x4d0   :  { %v1401_v58 = vpop.eup %1400  ;;  %v897_v59 = vadd.f32 1.0, %v1399_v57 }
 0x4d1   :  { %v919_v60 = vadd.f32 1.0, %v1401_v58 }
 0x4d2   :  { %1402 = vrcp.f32 %v897_v59  ;;  %v909_v61 = vand.u32 2147483648, %v897_v59  ;;  %v907_v5 = vand.u32 2147483647, %v897_v59  ;;  %vm903_vm5 = vweird.f32 %v897_v59 }
 0x4d3   :  { %1404 = vrcp.f32 %v919_v60  ;;  %v931_v21 = vand.u32 2147483648, %v919_v60  ;;  %vm925_vm9 = vweird.f32 %v919_v60  ;;  %v929_v14 = vand.u32 2147483647, %v919_v60 }
 0x4d4   :  { %v910_v17 = vor.u32 1.1754944e-38, %v909_v61  ;;  %vm908_vm7 = vcmp.eq.f32.partialorder %v907_v5, 8.507059e+37 }
 0x4d5   :  { %v932_v16 = vor.u32 1.1754944e-38, %v931_v21  ;;  %vm930_vm11 = vcmp.eq.f32.partialorder %v929_v14, 8.507059e+37 }
 0x4d8   :  { %v1403_v62 = vpop.eup %1402 }
 0x4d9   :  { %v1405_v63 = vpop.eup %1404  ;;  %v899_v0 = vmul.f32 %v1403_v62, %v897_v59  ;;  %vm904_vm4 = vweird.f32 %v1403_v62 }
 0x4da   :  { %v921_v1 = vmul.f32 %v1405_v63, %v919_v60  ;;  %vm905_vm6 = vmor %vm903_vm5, %vm904_vm4  ;;  %vm926_vm8 = vweird.f32 %v1405_v63  ;;  %v1319_v60 = vld [vmem:[#allocation11 + $0x20] sm:$0xff] }
 0x4db   :  { %v900_v46 = vsub.f32 1.0, %v899_v0  ;;  %vm927_vm10 = vmor %vm925_vm9, %vm926_vm8  ;;  %1173 = vmatpush.bf16.msrb.mxu2 %v1319_v60 }
 0x4dc   :  { %v922_v2 = vsub.f32 1.0, %v921_v1 }
 0x4dd   :  { %v901_v3 = vmul.f32 %v1403_v62, %v900_v46 }
 0x4de   :  { %v923_v9 = vmul.f32 %v1405_v63, %v922_v2 }
 0x4df   :  { %v902_v13 = vadd.f32 %v1403_v62, %v901_v3 }
 0x4e0   :  { %v924_v18 = vadd.f32 %v1405_v63, %v923_v9 }
 0x4e1   :  { %v906_v6 = vsel %vm905_vm6, %v1403_v62, %v902_v13 }
 0x4e2   :  { %v911_v8 = vsel %vm908_vm7, %v910_v17, %v906_v6  ;;  %v928_v26 = vsel %vm927_vm10, %v1405_v63, %v924_v18  ;;  %v1033_v17 = vld [vmem:[#allocation4 + $0x38] sm:$0xff] }
 0x4e3   :  { %v938_v10 = vmul.f32 %v937_v4, %v911_v8  ;;  %v933_v27 = vsel %vm930_vm11, %v932_v16, %v928_v26  ;;  %v1318_v16 = vld [vmem:[#allocation11 + $0x18] sm:$0xff] }
 0x4e4   :  { %v941_v19 = vsub.f32 1.0, %v933_v27  ;;  %v943_v30 = vmul.f32 %v933_v27, %v847_v43  ;;  %1174 = vmatpush.bf16.msrb.mxu2 %v1318_v16  ;;  %v1317_v27 = vld [vmem:[#allocation11 + $0x10] sm:$0xff] }
 0x4e5   :  { %v939_v15 = vadd.f32 %v938_v10, %v936_v11 }
 0x4e7   :  { %1406 = vtanh.f32 %v939_v15 }
 0x4e8   :  { %1175 = vmatpush.bf16.msrb.mxu2 %v1317_v27 }
 0x4ed   :  { %v1407_v28 = vpop.eup %1406 }
 0x4ee   :  { %v942_v29 = vmul.f32 %v1407_v28, %v941_v19  ;;  %v1067_v19 = vpop.f32.mrf.mxu0 }
 0x4f0   :  { %v1822_v20 = vadd.f32 %v943_v30, %v942_v29  ;;  %v1316_v29 = vld [vmem:[#allocation11 + $0x8] sm:$0xff]  ;;  %v1315_v30 = vld [vmem:[#allocation11] sm:$0xff] }
 0x4f1   :  { %1176 = vmatpush.bf16.msrb.mxu2 %v1316_v29 }
 0x4f2   :  { %v945_v31 = vpack.c.bf16 %v1822_v20, %v1822_v20 }
 0x4f4   :  { %1260 = vmatmul.msk.bf16.vlgmr.msrb.gmra.mxu1 %vm168_vm0, %v945_v31  ;;  %1261 = vmatmul.msk.bf16.vlgmr.msra.gmra.mxu2 %vm168_vm0, %v945_v31 }
 0x4f5   :  { %1262 = vmatmul.msk.bf16.vlgmr.msra.gmra.mxu3 %vm168_vm0, %v945_v31  ;;  %1177 = vmatpush.bf16.msrb.mxu2 %v1315_v30  ;;  %v1336_v31 = vld [vmem:[%s1854_s7] ss:$0 sm:$0xff] }
 0x4f6   :  { %v1069_v28 = vpop.f32.mrf.mxu0 }
 0x571   :  { %v958_v22 = vpop.f32.mrf.mxu1 }
 0x572   :  { %v990_v24 = vadd.f32 %v989_v23, %v958_v22 }
 0x574   :  { %v1263_v32 = vmul.f32 -1.442695, %v990_v24 }
 0x576   :  { %1408 = vpow2.f32 %v1263_v32 }
 0x577   :  { %v971_v34 = vpop.f32.mrf.mxu2 }
 0x578   :  { %v1012_v36 = vadd.f32 %v1011_v35, %v971_v34  ;;  %v984_v37 = vpop.f32.mrf.mxu3  ;;  %v1337_v34 = vld [vmem:[%s1854_s7 + $0x1] ss:$0 sm:$0xff] }
 0x579   :  { %v960_v39 = vpop.f32.mrf.mxu1  ;;  %v1034_v61 = vadd.f32 %v984_v37, %v1694_v12 }
 0x57a   :  { %v1264_v41 = vmul.f32 -1.442695, %v1012_v36 }
 0x57c   :  { %v1409_v43 = vpop.eup %1408  ;;  %1410 = vpow2.f32 %v1264_v41 }
 0x57d   :  { %v994_v45 = vadd.f32 1.0, %v1409_v43 }
 0x57f   :  { %1412 = vrcp.f32 %v994_v45  ;;  %v973_v48 = vpop.f32.mrf.mxu2  ;;  %v1006_v56 = vand.u32 2147483648, %v994_v45  ;;  %v1004_v58 = vand.u32 2147483647, %v994_v45  ;;  %vm1000_vm15 = vweird.f32 %v994_v45 }
 0x580   :  { %v986_v47 = vpop.f32.mrf.mxu3 }
 0x581   :  { %v1007_v0 = vor.u32 1.1754944e-38, %v1006_v56  ;;  %vm1005_vm2 = vcmp.eq.f32.partialorder %v1004_v58, 8.507059e+37 }
 0x582   :  { %v1411_v49 = vpop.eup %1410 }
 0x583   :  { %v1016_v50 = vadd.f32 1.0, %v1411_v49 }
 0x585   :  { %v1413_v52 = vpop.eup %1412  ;;  %1414 = vrcp.f32 %v1016_v50  ;;  %v1028_v5 = vand.u32 2147483648, %v1016_v50  ;;  %v1026_v13 = vand.u32 2147483647, %v1016_v50  ;;  %vm1022_vm4 = vweird.f32 %v1016_v50 }
 0x586   :  { %v996_v53 = vmul.f32 %v1413_v52, %v994_v45  ;;  %vm1001_vm14 = vweird.f32 %v1413_v52 }
 0x587   :  { %vm1002_vm1 = vmor %vm1000_vm15, %vm1001_vm14  ;;  %v1029_v8 = vor.u32 1.1754944e-38, %v1028_v5  ;;  %vm1027_vm6 = vcmp.eq.f32.partialorder %v1026_v13, 8.507059e+37 }
 0x588   :  { %v997_v55 = vsub.f32 1.0, %v996_v53 }
 0x58a   :  { %v998_v57 = vmul.f32 %v1413_v52, %v997_v55 }
 0x58b   :  { %v1415_v59 = vpop.eup %1414 }
 0x58c   :  { %v1018_v62 = vmul.f32 %v1415_v59, %v1016_v50  ;;  %v999_v63 = vadd.f32 %v1413_v52, %v998_v57  ;;  %vm1023_vm3 = vweird.f32 %v1415_v59 }
 0x58d   :  { %vm1024_vm5 = vmor %vm1022_vm4, %vm1023_vm3 }
 0x58e   :  { %v1019_v1 = vsub.f32 1.0, %v1018_v62  ;;  %v1003_v46 = vsel %vm1002_vm1, %v1413_v52, %v999_v63 }
 0x58f   :  { %v1008_v2 = vsel %vm1005_vm2, %v1007_v0, %v1003_v46 }
 0x590   :  { %v1020_v3 = vmul.f32 %v1415_v59, %v1019_v1  ;;  %v1035_v9 = vmul.f32 %v1034_v61, %v1008_v2 }
 0x592   :  { %v1021_v4 = vadd.f32 %v1415_v59, %v1020_v3  ;;  %v1036_v6 = vadd.f32 %v1035_v9, %v1033_v17 }
 0x594   :  { %v1025_v18 = vsel %vm1024_vm5, %v1415_v59, %v1021_v4  ;;  %1416 = vtanh.f32 %v1036_v6 }
 0x595   :  { %v1030_v10 = vsel %vm1027_vm6, %v1029_v8, %v1025_v18 }
 0x596   :  { %v1038_v21 = vsub.f32 1.0, %v1030_v10  ;;  %v1040_v14 = vmul.f32 %v1030_v10, %v1822_v20 }
 0x59a   :  { %v1417_v11 = vpop.eup %1416 }
 0x59b   :  { %v1039_v12 = vmul.f32 %v1417_v11, %v1038_v21 }
 0x59d   :  { %v1041_v15 = vadd.f32 %v1040_v14, %v1039_v12 }
 0x59f   :  { %v1042_v26 = vpack.c.bf16 %v1041_v15, %v1041_v15 }
 0x5a1   :  { %1274 = vmatmul.msk.bf16.vlgmr.msra.gmra.mxu1 %vm168_vm0, %v1042_v26 }
 0x61e   :  { %v1095_v22 = vpop.f32.mrf.mxu1 }
 0x61f   :  { %v1096_v20 = vadd.f32 %v1095_v22, %v1067_v19 }
 0x621   :  { %v1101_v23 = vadd.f32 %v1336_v31, %v1096_v20 }
 0x623   :  { %v1102_v24 = vmax.f32 %v1101_v23, 0.0 }
 0x625   :  { %v1103_v32 = vpack.c.bf16 %v1102_v24, %v1102_v24 }
 0x626   :  { %v1097_v33 = vpop.f32.mrf.mxu1 }
 0x627   :  { %1178 = vmatmul.bf16.vlgmr.msrb.gmra.mxu2 %v1103_v32 }
 0x6aa   :  { %v1179_v35 = vpop.f32.mrf.mxu2 }
 0x6ab   :  { %v1180_v25 = vadd.f32 %v1337_v34, %v1179_v35 }
 0x6ad   :  { %v1183_v36 = vmax.f32 %v1180_v25, 0.0 }
 0x6af   :  { %1184 = vst [vmem:[#allocation13] sm:$0xff] %v1183_v36 }
 0x6b0   :  { %1195 = dma.vmem_to_hbm [thread:$0]  %s1191_s11, 128, %s1193_s14, [#allocation7]  }
 0x6b2   :  { %v1181_v37 = vpop.f32.mrf.mxu2 }
 0x6b3   :  { %1544 = dma.done.wait [#allocation7], 128  }
 0x6b4   :  { %1545 = vsyncadd [#allocation7], 4294967168 }
 0x6b5   :  { %1200 = vsyncpa [#allocation6], 1 }
 0x6b6   :  { %1201 = vsyncpa [#allocation9], 1 }
 0x6b7   :  { %1202 = vsyncpa [#allocation12], 1 }
 0x6b8   :  { %1203 = vsyncpa [#allocation7], 1 }

</bundles_post_ra>
